<compile_context>
chip_gen: v7x
topology: tpu7x:2x2x1
jax: 0.10.0
libtpu: 0.0.40
codegen_flags: <defaults>
</compile_context>

<pallas_src>
import functools
import math

import jax
import jax.numpy as jnp
from jax.experimental import pallas as pl
from jax.experimental.pallas import tpu as pltpu


def _layernorm(x, gamma, beta, eps=1e-6):
    mu = jnp.mean(x, axis=-1, keepdims=True)
    xc = x - mu
    var = jnp.mean(xc * xc, axis=-1, keepdims=True)
    return xc * jax.lax.rsqrt(var + eps) * gamma + beta


def _gelu_exact(x):
    # torch.nn.functional.gelu default = exact erf form
    return 0.5 * x * (1.0 + jax.lax.erf(x * (1.0 / math.sqrt(2.0))))


def block_kernel(x_ref,
                 ln1_g_ref, ln1_b_ref,
                 wqkv_ref, bqkv_ref,
                 wo_ref, bo_ref,
                 ln2_g_ref, ln2_b_ref,
                 w1_ref, b1_ref, w2_ref, b2_ref,
                 o_ref,
                 *, num_heads: int, batch_block: int, seq_len: int):
    bt, S = batch_block, seq_len
    H = x_ref.shape[-1]
    hd = H // num_heads
    N = bt * S

    # One grid step == `bt` batch elements; flatten to (N, H) rows so the
    # projection / MLP matmuls use a large M dimension.
    x = x_ref[...].reshape(N, H)                      # (N, H) f32

    # Read biases / LN params once (hoisted broadcasts).
    g1, be1 = ln1_g_ref[...], ln1_b_ref[...]
    g2, be2 = ln2_g_ref[...], ln2_b_ref[...]
    bqkv = bqkv_ref[...]
    bo = bo_ref[...]
    b1 = b1_ref[...]
    b2 = b2_ref[...]

    # ---------------- attention branch ----------------
    xn = _layernorm(x, g1, be1)                       # (N, H) f32
    xn_b = xn.astype(jnp.bfloat16)                    # bf16 MXU operands, f32 acc

    # Fused QKV: one lane-dense (N, H) x (H, 3H) matmul.  Q columns already
    # carry the 1/sqrt(hd) scale (folded in the wrapper).
    qkv = jnp.dot(xn_b, wqkv_ref[...],
                  preferred_element_type=jnp.float32) + bqkv   # (N, 3H) f32

    # Tiny per-(batch, head) scores / softmax / PV loop (static, small).
    ctx_rows = []
    for b in range(bt):
        r0 = b * S
        head_ctx = []
        for h in range(num_heads):
            c0 = h * hd
            q = qkv[r0:r0 + S, c0:c0 + hd]                       # (S, hd) pre-scaled
            k = qkv[r0:r0 + S, H + c0:H + c0 + hd]               # (S, hd)
            v = qkv[r0:r0 + S, 2 * H + c0:2 * H + c0 + hd]       # (S, hd)
            s = jax.lax.dot_general(q, k, (((1,), (1,)), ((), ())),
                                    preferred_element_type=jnp.float32)  # (S, S)
            s = s - jnp.max(s, axis=-1, keepdims=True)
            p = jnp.exp(s)
            p = p * pl.reciprocal(jnp.sum(p, axis=-1, keepdims=True), approx=True)
            # TODO(synk): attn_dropout is identity in eval mode (training dropout not implemented).
            head_ctx.append(jnp.dot(p, v, preferred_element_type=jnp.float32))
        ctx_rows.append(jnp.concatenate(head_ctx, axis=-1))      # (S, H)
    ctx = ctx_rows[0] if bt == 1 else jnp.concatenate(ctx_rows, axis=0)  # (N, H)

    # Fused output projection: one (N, H) x (H, H) matmul.
    attn = jnp.dot(ctx.astype(jnp.bfloat16), wo_ref[...],
                   preferred_element_type=jnp.float32) + bo
    # TODO(synk): proj_dropout is identity in eval mode.
    x2 = attn + x                                     # residual 1

    # ---------------- MLP branch ----------------
    xn2 = _layernorm(x2, g2, be2)
    h1 = jnp.dot(xn2.astype(jnp.bfloat16), w1_ref[...],
                 preferred_element_type=jnp.float32) + b1
    h1 = _gelu_exact(h1)
    # TODO(synk): MLP dropout is identity in eval mode.
    y = jnp.dot(h1.astype(jnp.bfloat16), w2_ref[...],
                preferred_element_type=jnp.float32) + b2
    o_ref[...] = (y + x2).reshape(bt, S, H).astype(o_ref.dtype)  # residual 2


def block_forward(x, params, num_heads, batch_block=None):
    """x: (B, S, H) float32. Returns (out, None) mirroring Block.forward (vis=False)."""
    B, S, H = x.shape
    hd = H // num_heads
    M = params["w1"].shape[1]
    bf16 = jnp.bfloat16
    scale = 1.0 / math.sqrt(hd)

    # At least 2 grid steps when B >= 2 (keeps both v7x TensorCores busy),
    # while packing as many batch elements per step as possible (raises the
    # MXU M dimension and amortizes per-grid-step overhead on v5e/v6e).
    if batch_block is None:
        batch_block = B if B < 2 else max(1, B // 2)
    while B % batch_block != 0:
        batch_block -= 1
    bt = batch_block
    num_steps = B // bt

    # Fused QKV weight/bias, 1/sqrt(hd) folded into the Q columns; bf16 weights
    # (halves weight HBM traffic), biases stay f32.
    wqkv = jnp.concatenate([params["wq"] * scale, params["wk"], params["wv"]],
                           axis=1).astype(bf16)                      # (H, 3H)
    bqkv = jnp.concatenate([params["bq"] * scale, params["bk"], params["bv"]],
                           axis=1)                                   # (1, 3H)
    wo = params["wo"].astype(bf16)
    w1 = params["w1"].astype(bf16)
    w2 = params["w2"].astype(bf16)

    const2 = lambda i: (0, 0)

    # VMEM budget derived from the actual block shapes (matters on v7x: 64 MiB).
    vmem_bytes = 4 * (bt * S * H * 4)                                # x + out, double-buffered
    vmem_bytes += 2 * 2 * (3 * H * H + H * H + H * M + M * H)        # bf16 weights (double-buffered)
    vmem_bytes += 4 * (3 * H + 6 * H + M)                            # biases / LN params
    vmem_bytes += 4 * bt * S * (3 * H + M + 8 * H)                   # f32 intermediates
    vmem_limit = int(min(128 * 1024 * 1024, max(2 * vmem_bytes, 16 * 1024 * 1024)))

    out = pl.pallas_call(
        functools.partial(block_kernel, num_heads=num_heads,
                          batch_block=bt, seq_len=S),
        out_shape=jax.ShapeDtypeStruct((B, S, H), x.dtype),
        grid=(num_steps,),
        in_specs=[
            pl.BlockSpec((bt, S, H), lambda i: (i, 0, 0)),           # x
            pl.BlockSpec((1, H), const2),                            # ln1 gamma
            pl.BlockSpec((1, H), const2),                            # ln1 beta
            pl.BlockSpec((H, 3 * H), const2),                        # wqkv (fused)
            pl.BlockSpec((1, 3 * H), const2),                        # bqkv (fused)
            pl.BlockSpec((H, H), const2),                            # wo
            pl.BlockSpec((1, H), const2),                            # bo
            pl.BlockSpec((1, H), const2),                            # ln2 gamma
            pl.BlockSpec((1, H), const2),                            # ln2 beta
            pl.BlockSpec((H, M), const2),                            # w1
            pl.BlockSpec((1, M), const2),                            # b1
            pl.BlockSpec((M, H), const2),                            # w2
            pl.BlockSpec((1, H), const2),                            # b2
        ],
        out_specs=pl.BlockSpec((bt, S, H), lambda i: (i, 0, 0)),
        compiler_params=pltpu.CompilerParams(
            dimension_semantics=("parallel",),
            vmem_limit_bytes=vmem_limit,
        ),
    )(x,
      params["ln1_g"], params["ln1_b"],
      wqkv, bqkv,
      wo, params["bo"],
      params["ln2_g"], params["ln2_b"],
      w1, params["b1"], w2, params["b2"])

    # TODO(synk): vis=True attention-weights output is not returned (weights=None).
    return out, None


def _reference(x, params, num_heads, matmul_dtype):
    """Pure-JAX reference.  matmul_dtype=bfloat16 mirrors the kernel's MXU
    operand quantization; matmul_dtype=float32 is the true f32 PyTorch math."""
    B, S, H = x.shape
    hd = H // num_heads

    def lin(z, w, b):
        return jnp.dot(z.astype(matmul_dtype), w.astype(matmul_dtype),
                       preferred_element_type=jnp.float32) + b

    h = x
    xn = _layernorm(x, params["ln1_g"], params["ln1_b"])
    x2 = xn.reshape(B * S, H)
    q = lin(x2, params["wq"], params["bq"]).reshape(B, S, num_heads, hd).transpose(0, 2, 1, 3)
    k = lin(x2, params["wk"], params["bk"]).reshape(B, S, num_heads, hd).transpose(0, 2, 1, 3)
    v = lin(x2, params["wv"], params["bv"]).reshape(B, S, num_heads, hd).transpose(0, 2, 1, 3)
    s = jnp.einsum("bhqd,bhkd->bhqk", q, k) / math.sqrt(hd)
    p = jax.nn.softmax(s, axis=-1)
    ctx = jnp.einsum("bhqk,bhkd->bhqd", p, v).transpose(0, 2, 1, 3).reshape(B * S, H)
    attn_out = lin(ctx, params["wo"], params["bo"]).reshape(B, S, H)
    x = attn_out + h
    h = x
    xn2 = _layernorm(x, params["ln2_g"], params["ln2_b"]).reshape(B * S, H)
    y = lin(xn2, params["w1"], params["b1"])
    y = _gelu_exact(y)
    y = lin(y, params["w2"], params["b2"]).reshape(B, S, H)
    return y + h


if __name__ == "__main__":
    # config.hidden_size = 128 (lane-dense), num_heads = 4 (head_dim = 32),
    # mlp_dim = 256; batch = 2, seq = 8.
    B, S, H, NH, M = 2, 8, 128, 4, 256

    key = jax.random.PRNGKey(0)
    keys = jax.random.split(key, 13)
    x = jax.random.normal(keys[0], (B, S, H), jnp.float32)

    def torch_linear_init(kw, kb, fan_in, fan_out):
        # approximates torch.nn.Linear default init; weight stored (in, out)
        bnd = 1.0 / math.sqrt(fan_in)
        w = jax.random.uniform(kw, (fan_in, fan_out), jnp.float32, -bnd, bnd)
        b = jax.random.uniform(kb, (1, fan_out), jnp.float32, -bnd, bnd)
        return w, b

    def xavier(kw, fan_in, fan_out):
        lim = math.sqrt(6.0 / (fan_in + fan_out))
        return jax.random.uniform(kw, (fan_in, fan_out), jnp.float32, -lim, lim)

    wq, bq = torch_linear_init(keys[1], keys[2], H, H)
    wk, bk = torch_linear_init(keys[3], keys[4], H, H)
    wv, bv = torch_linear_init(keys[5], keys[6], H, H)
    wo, bo = torch_linear_init(keys[7], keys[8], H, H)
    w1 = xavier(keys[9], H, M)
    b1 = 1e-6 * jax.random.normal(keys[10], (1, M), jnp.float32)
    w2 = xavier(keys[11], M, H)
    b2 = 1e-6 * jax.random.normal(keys[12], (1, H), jnp.float32)

    params = dict(
        ln1_g=jnp.ones((1, H), jnp.float32), ln1_b=jnp.zeros((1, H), jnp.float32),
        wq=wq, bq=bq, wk=wk, bk=bk, wv=wv, bv=bv, wo=wo, bo=bo,
        ln2_g=jnp.ones((1, H), jnp.float32), ln2_b=jnp.zeros((1, H), jnp.float32),
        w1=w1, b1=b1, w2=w2, b2=b2,
    )

    out, weights = block_forward(x, params, NH)
    jax.block_until_ready(out)
    assert out.shape == (B, S, H)

    # Reference with identical bf16-operand / f32-accumulate matmuls (tight tol).
    ref_bf16 = _reference(x, params, NH, jnp.bfloat16)
    err_b = float(jnp.max(jnp.abs(out - ref_bf16)))
    assert jnp.allclose(out, ref_bf16, atol=2e-2, rtol=2e-2), err_b

    # True f32 PyTorch-equivalent math (documents the bf16 quantization error).
    ref_f32 = _reference(x, params, NH, jnp.float32)
    err_f = float(jnp.max(jnp.abs(out - ref_f32)))
    assert jnp.allclose(out, ref_f32, atol=5e-2, rtol=5e-2), err_f

    print("KERNEL_OK")
</pallas_src>

<mosaic_0001>
module attributes {stable_mosaic.version = 11 : i64} {
  func.func @block_kernel(%arg0: i32, %arg1: memref<1x8x128xf32, #tpu.memory_space<vmem>>, %arg2: memref<1x128xf32, #tpu.memory_space<vmem>>, %arg3: memref<1x128xf32, #tpu.memory_space<vmem>>, %arg4: memref<128x384xbf16, #tpu.memory_space<vmem>>, %arg5: memref<1x384xf32, #tpu.memory_space<vmem>>, %arg6: memref<128x128xbf16, #tpu.memory_space<vmem>>, %arg7: memref<1x128xf32, #tpu.memory_space<vmem>>, %arg8: memref<1x128xf32, #tpu.memory_space<vmem>>, %arg9: memref<1x128xf32, #tpu.memory_space<vmem>>, %arg10: memref<128x256xbf16, #tpu.memory_space<vmem>>, %arg11: memref<1x256xf32, #tpu.memory_space<vmem>>, %arg12: memref<256x128xbf16, #tpu.memory_space<vmem>>, %arg13: memref<1x128xf32, #tpu.memory_space<vmem>>, %arg14: memref<1x8x128xf32, #tpu.memory_space<vmem>>) attributes {dimension_semantics = [#tpu.dimension_semantics<parallel>], iteration_bounds = array<i64: 2>, scalar_prefetch = 0 : i64, scratch_operands = 0 : i64, tpu.core_type = #tpu.core_type<tc>, window_params = [{transform_indices = @transform_0, window_bounds = array<i64: 1, 8, 128>}, {pipeline_mode = #tpu.pipeline_mode<synchronous>, transform_indices = @transform_1, window_bounds = array<i64: 1, 128>}, {pipeline_mode = #tpu.pipeline_mode<synchronous>, transform_indices = @transform_2, window_bounds = array<i64: 1, 128>}, {pipeline_mode = #tpu.pipeline_mode<synchronous>, transform_indices = @transform_3, window_bounds = array<i64: 128, 384>}, {pipeline_mode = #tpu.pipeline_mode<synchronous>, transform_indices = @transform_4, window_bounds = array<i64: 1, 384>}, {pipeline_mode = #tpu.pipeline_mode<synchronous>, transform_indices = @transform_5, window_bounds = array<i64: 128, 128>}, {pipeline_mode = #tpu.pipeline_mode<synchronous>, transform_indices = @transform_6, window_bounds = array<i64: 1, 128>}, {pipeline_mode = #tpu.pipeline_mode<synchronous>, transform_indices = @transform_7, window_bounds = array<i64: 1, 128>}, {pipeline_mode = #tpu.pipeline_mode<synchronous>, transform_indices = @transform_8, window_bounds = array<i64: 1, 128>}, {pipeline_mode = #tpu.pipeline_mode<synchronous>, transform_indices = @transform_9, window_bounds = array<i64: 128, 256>}, {pipeline_mode = #tpu.pipeline_mode<synchronous>, transform_indices = @transform_10, window_bounds = array<i64: 1, 256>}, {pipeline_mode = #tpu.pipeline_mode<synchronous>, transform_indices = @transform_11, window_bounds = array<i64: 256, 128>}, {pipeline_mode = #tpu.pipeline_mode<synchronous>, transform_indices = @transform_12, window_bounds = array<i64: 1, 128>}, {transform_indices = @transform_13, window_bounds = array<i64: 1, 8, 128>}]} {
    %c0 = arith.constant 0 : index
    %c0_0 = arith.constant 0 : index
    %c0_1 = arith.constant 0 : index
    %0 = vector.load %arg1[%c0, %c0_0, %c0_1] : memref<1x8x128xf32, #tpu.memory_space<vmem>>, vector<1x8x128xf32>
    %1 = vector.shape_cast %0 : vector<1x8x128xf32> to vector<8x128xf32>
    %c0_2 = arith.constant 0 : index
    %c0_3 = arith.constant 0 : index
    %2 = vector.load %arg2[%c0_2, %c0_3] : memref<1x128xf32, #tpu.memory_space<vmem>>, vector<1x128xf32>
    %c0_4 = arith.constant 0 : index
    %c0_5 = arith.constant 0 : index
    %3 = vector.load %arg3[%c0_4, %c0_5] : memref<1x128xf32, #tpu.memory_space<vmem>>, vector<1x128xf32>
    %c0_6 = arith.constant 0 : index
    %c0_7 = arith.constant 0 : index
    %4 = vector.load %arg8[%c0_6, %c0_7] : memref<1x128xf32, #tpu.memory_space<vmem>>, vector<1x128xf32>
    %c0_8 = arith.constant 0 : index
    %c0_9 = arith.constant 0 : index
    %5 = vector.load %arg9[%c0_8, %c0_9] : memref<1x128xf32, #tpu.memory_space<vmem>>, vector<1x128xf32>
    %c0_10 = arith.constant 0 : index
    %c0_11 = arith.constant 0 : index
    %6 = vector.load %arg5[%c0_10, %c0_11] : memref<1x384xf32, #tpu.memory_space<vmem>>, vector<1x384xf32>
    %c0_12 = arith.constant 0 : index
    %c0_13 = arith.constant 0 : index
    %7 = vector.load %arg7[%c0_12, %c0_13] : memref<1x128xf32, #tpu.memory_space<vmem>>, vector<1x128xf32>
    %c0_14 = arith.constant 0 : index
    %c0_15 = arith.constant 0 : index
    %8 = vector.load %arg11[%c0_14, %c0_15] : memref<1x256xf32, #tpu.memory_space<vmem>>, vector<1x256xf32>
    %c0_16 = arith.constant 0 : index
    %c0_17 = arith.constant 0 : index
    %9 = vector.load %arg13[%c0_16, %c0_17] : memref<1x128xf32, #tpu.memory_space<vmem>>, vector<1x128xf32>
    %cst = arith.constant dense<0.000000e+00> : vector<8xf32>
    %10 = vector.multi_reduction <add>, %1, %cst [1] : vector<8x128xf32> to vector<8xf32>
    %11 = vector.shape_cast %10 : vector<8xf32> to vector<8x1xf32>
    %cst_18 = arith.constant 1.280000e+02 : f32
    %12 = vector.broadcast %cst_18 : f32 to vector<8x1xf32>
    %13 = arith.divf %11, %12 : vector<8x1xf32>
    %14 = vector.broadcast %13 : vector<8x1xf32> to vector<8x128xf32>
    %15 = arith.subf %1, %14 : vector<8x128xf32>
    %16 = arith.mulf %15, %15 : vector<8x128xf32>
    %cst_19 = arith.constant dense<0.000000e+00> : vector<8xf32>
    %17 = vector.multi_reduction <add>, %16, %cst_19 [1] : vector<8x128xf32> to vector<8xf32>
    %18 = vector.shape_cast %17 : vector<8xf32> to vector<8x1xf32>
    %cst_20 = arith.constant 1.280000e+02 : f32
    %19 = vector.broadcast %cst_20 : f32 to vector<8x1xf32>
    %20 = arith.divf %18, %19 : vector<8x1xf32>
    %cst_21 = arith.constant 9.99999997E-7 : f32
    %21 = vector.broadcast %cst_21 : f32 to vector<8x1xf32>
    %22 = arith.addf %20, %21 : vector<8x1xf32>
    %23 = math.rsqrt %22 : vector<8x1xf32>
    %24 = vector.broadcast %23 : vector<8x1xf32> to vector<8x128xf32>
    %25 = arith.mulf %15, %24 : vector<8x128xf32>
    %26 = vector.broadcast %2 : vector<1x128xf32> to vector<8x128xf32>
    %27 = arith.mulf %25, %26 : vector<8x128xf32>
    %28 = vector.broadcast %3 : vector<1x128xf32> to vector<8x128xf32>
    %29 = arith.addf %27, %28 : vector<8x128xf32>
    %30 = arith.truncf %29 : vector<8x128xf32> to vector<8x128xbf16>
    %c0_22 = arith.constant 0 : index
    %c0_23 = arith.constant 0 : index
    %31 = vector.load %arg4[%c0_22, %c0_23] : memref<128x384xbf16, #tpu.memory_space<vmem>>, vector<128x384xbf16>
    %cst_24 = arith.constant dense<0.000000e+00> : vector<8x384xf32>
    %32 = tpu.matmul %30, %31, %cst_24 {dimension_numbers = #tpu.dot_dimension_numbers<[1], [0], [0], [1], [0, 0, 1, 1], [], []>} : vector<8x128xbf16>, vector<128x384xbf16>, vector<8x384xf32> -> vector<8x384xf32>
    %33 = vector.broadcast %6 : vector<1x384xf32> to vector<8x384xf32>
    %34 = arith.addf %32, %33 : vector<8x384xf32>
    %35 = vector.extract_strided_slice %34 {offsets = [0, 0], sizes = [8, 32], strides = [1, 1]} : vector<8x384xf32> to vector<8x32xf32>
    %36 = vector.extract_strided_slice %34 {offsets = [0, 128], sizes = [8, 32], strides = [1, 1]} : vector<8x384xf32> to vector<8x32xf32>
    %37 = vector.extract_strided_slice %34 {offsets = [0, 256], sizes = [8, 32], strides = [1, 1]} : vector<8x384xf32> to vector<8x32xf32>
    %cst_25 = arith.constant dense<0.000000e+00> : vector<8x8xf32>
    %38 = tpu.matmul %35, %36, %cst_25 {dimension_numbers = #tpu.dot_dimension_numbers<[1], [1], [0], [0], [0, 0, 1, 0], [], []>} : vector<8x32xf32>, vector<8x32xf32>, vector<8x8xf32> -> vector<8x8xf32>
    %cst_26 = arith.constant dense<0xFF800000> : vector<8xf32>
    %39 = vector.multi_reduction <maximumf>, %38, %cst_26 [1] : vector<8x8xf32> to vector<8xf32>
    %40 = vector.shape_cast %39 : vector<8xf32> to vector<8x1xf32>
    %41 = vector.broadcast %40 : vector<8x1xf32> to vector<8x8xf32>
    %42 = arith.subf %38, %41 : vector<8x8xf32>
    %43 = math.exp %42 : vector<8x8xf32>
    %cst_27 = arith.constant dense<0.000000e+00> : vector<8xf32>
    %44 = vector.multi_reduction <add>, %43, %cst_27 [1] : vector<8x8xf32> to vector<8xf32>
    %45 = vector.shape_cast %44 : vector<8xf32> to vector<8x1xf32>
    %46 = tpu.reciprocal %45 {approx = true} : vector<8x1xf32> -> vector<8x1xf32>
    %47 = vector.broadcast %46 : vector<8x1xf32> to vector<8x8xf32>
    %48 = arith.mulf %43, %47 : vector<8x8xf32>
    %cst_28 = arith.constant dense<0.000000e+00> : vector<8x32xf32>
    %49 = tpu.matmul %48, %37, %cst_28 {dimension_numbers = #tpu.dot_dimension_numbers<[1], [0], [0], [1], [0, 0, 1, 1], [], []>} : vector<8x8xf32>, vector<8x32xf32>, vector<8x32xf32> -> vector<8x32xf32>
    %50 = vector.extract_strided_slice %34 {offsets = [0, 32], sizes = [8, 32], strides = [1, 1]} : vector<8x384xf32> to vector<8x32xf32>
    %51 = vector.extract_strided_slice %34 {offsets = [0, 160], sizes = [8, 32], strides = [1, 1]} : vector<8x384xf32> to vector<8x32xf32>
    %52 = vector.extract_strided_slice %34 {offsets = [0, 288], sizes = [8, 32], strides = [1, 1]} : vector<8x384xf32> to vector<8x32xf32>
    %cst_29 = arith.constant dense<0.000000e+00> : vector<8x8xf32>
    %53 = tpu.matmul %50, %51, %cst_29 {dimension_numbers = #tpu.dot_dimension_numbers<[1], [1], [0], [0], [0, 0, 1, 0], [], []>} : vector<8x32xf32>, vector<8x32xf32>, vector<8x8xf32> -> vector<8x8xf32>
    %cst_30 = arith.constant dense<0xFF800000> : vector<8xf32>
    %54 = vector.multi_reduction <maximumf>, %53, %cst_30 [1] : vector<8x8xf32> to vector<8xf32>
    %55 = vector.shape_cast %54 : vector<8xf32> to vector<8x1xf32>
    %56 = vector.broadcast %55 : vector<8x1xf32> to vector<8x8xf32>
    %57 = arith.subf %53, %56 : vector<8x8xf32>
    %58 = math.exp %57 : vector<8x8xf32>
    %cst_31 = arith.constant dense<0.000000e+00> : vector<8xf32>
    %59 = vector.multi_reduction <add>, %58, %cst_31 [1] : vector<8x8xf32> to vector<8xf32>
    %60 = vector.shape_cast %59 : vector<8xf32> to vector<8x1xf32>
    %61 = tpu.reciprocal %60 {approx = true} : vector<8x1xf32> -> vector<8x1xf32>
    %62 = vector.broadcast %61 : vector<8x1xf32> to vector<8x8xf32>
    %63 = arith.mulf %58, %62 : vector<8x8xf32>
    %cst_32 = arith.constant dense<0.000000e+00> : vector<8x32xf32>
    %64 = tpu.matmul %63, %52, %cst_32 {dimension_numbers = #tpu.dot_dimension_numbers<[1], [0], [0], [1], [0, 0, 1, 1], [], []>} : vector<8x8xf32>, vector<8x32xf32>, vector<8x32xf32> -> vector<8x32xf32>
    %65 = vector.extract_strided_slice %34 {offsets = [0, 64], sizes = [8, 32], strides = [1, 1]} : vector<8x384xf32> to vector<8x32xf32>
    %66 = vector.extract_strided_slice %34 {offsets = [0, 192], sizes = [8, 32], strides = [1, 1]} : vector<8x384xf32> to vector<8x32xf32>
    %67 = vector.extract_strided_slice %34 {offsets = [0, 320], sizes = [8, 32], strides = [1, 1]} : vector<8x384xf32> to vector<8x32xf32>
    %cst_33 = arith.constant dense<0.000000e+00> : vector<8x8xf32>
    %68 = tpu.matmul %65, %66, %cst_33 {dimension_numbers = #tpu.dot_dimension_numbers<[1], [1], [0], [0], [0, 0, 1, 0], [], []>} : vector<8x32xf32>, vector<8x32xf32>, vector<8x8xf32> -> vector<8x8xf32>
    %cst_34 = arith.constant dense<0xFF800000> : vector<8xf32>
    %69 = vector.multi_reduction <maximumf>, %68, %cst_34 [1] : vector<8x8xf32> to vector<8xf32>
    %70 = vector.shape_cast %69 : vector<8xf32> to vector<8x1xf32>
    %71 = vector.broadcast %70 : vector<8x1xf32> to vector<8x8xf32>
    %72 = arith.subf %68, %71 : vector<8x8xf32>
    %73 = math.exp %72 : vector<8x8xf32>
    %cst_35 = arith.constant dense<0.000000e+00> : vector<8xf32>
    %74 = vector.multi_reduction <add>, %73, %cst_35 [1] : vector<8x8xf32> to vector<8xf32>
    %75 = vector.shape_cast %74 : vector<8xf32> to vector<8x1xf32>
    %76 = tpu.reciprocal %75 {approx = true} : vector<8x1xf32> -> vector<8x1xf32>
    %77 = vector.broadcast %76 : vector<8x1xf32> to vector<8x8xf32>
    %78 = arith.mulf %73, %77 : vector<8x8xf32>
    %cst_36 = arith.constant dense<0.000000e+00> : vector<8x32xf32>
    %79 = tpu.matmul %78, %67, %cst_36 {dimension_numbers = #tpu.dot_dimension_numbers<[1], [0], [0], [1], [0, 0, 1, 1], [], []>} : vector<8x8xf32>, vector<8x32xf32>, vector<8x32xf32> -> vector<8x32xf32>
    %80 = vector.extract_strided_slice %34 {offsets = [0, 96], sizes = [8, 32], strides = [1, 1]} : vector<8x384xf32> to vector<8x32xf32>
    %81 = vector.extract_strided_slice %34 {offsets = [0, 224], sizes = [8, 32], strides = [1, 1]} : vector<8x384xf32> to vector<8x32xf32>
    %82 = vector.extract_strided_slice %34 {offsets = [0, 352], sizes = [8, 32], strides = [1, 1]} : vector<8x384xf32> to vector<8x32xf32>
    %cst_37 = arith.constant dense<0.000000e+00> : vector<8x8xf32>
    %83 = tpu.matmul %80, %81, %cst_37 {dimension_numbers = #tpu.dot_dimension_numbers<[1], [1], [0], [0], [0, 0, 1, 0], [], []>} : vector<8x32xf32>, vector<8x32xf32>, vector<8x8xf32> -> vector<8x8xf32>
    %cst_38 = arith.constant dense<0xFF800000> : vector<8xf32>
    %84 = vector.multi_reduction <maximumf>, %83, %cst_38 [1] : vector<8x8xf32> to vector<8xf32>
    %85 = vector.shape_cast %84 : vector<8xf32> to vector<8x1xf32>
    %86 = vector.broadcast %85 : vector<8x1xf32> to vector<8x8xf32>
    %87 = arith.subf %83, %86 : vector<8x8xf32>
    %88 = math.exp %87 : vector<8x8xf32>
    %cst_39 = arith.constant dense<0.000000e+00> : vector<8xf32>
    %89 = vector.multi_reduction <add>, %88, %cst_39 [1] : vector<8x8xf32> to vector<8xf32>
    %90 = vector.shape_cast %89 : vector<8xf32> to vector<8x1xf32>
    %91 = tpu.reciprocal %90 {approx = true} : vector<8x1xf32> -> vector<8x1xf32>
    %92 = vector.broadcast %91 : vector<8x1xf32> to vector<8x8xf32>
    %93 = arith.mulf %88, %92 : vector<8x8xf32>
    %cst_40 = arith.constant dense<0.000000e+00> : vector<8x32xf32>
    %94 = tpu.matmul %93, %82, %cst_40 {dimension_numbers = #tpu.dot_dimension_numbers<[1], [0], [0], [1], [0, 0, 1, 1], [], []>} : vector<8x8xf32>, vector<8x32xf32>, vector<8x32xf32> -> vector<8x32xf32>
    %95 = tpu.concatenate %49, %64, %79, %94 in 1 : vector<8x32xf32>, vector<8x32xf32>, vector<8x32xf32>, vector<8x32xf32> -> vector<8x128xf32>
    %96 = arith.truncf %95 : vector<8x128xf32> to vector<8x128xbf16>
    %c0_41 = arith.constant 0 : index
    %c0_42 = arith.constant 0 : index
    %97 = vector.load %arg6[%c0_41, %c0_42] : memref<128x128xbf16, #tpu.memory_space<vmem>>, vector<128x128xbf16>
    %cst_43 = arith.constant dense<0.000000e+00> : vector<8x128xf32>
    %98 = tpu.matmul %96, %97, %cst_43 {dimension_numbers = #tpu.dot_dimension_numbers<[1], [0], [0], [1], [0, 0, 1, 1], [], []>} : vector<8x128xbf16>, vector<128x128xbf16>, vector<8x128xf32> -> vector<8x128xf32>
    %99 = vector.broadcast %7 : vector<1x128xf32> to vector<8x128xf32>
    %100 = arith.addf %98, %99 : vector<8x128xf32>
    %101 = arith.addf %100, %1 : vector<8x128xf32>
    %cst_44 = arith.constant dense<0.000000e+00> : vector<8xf32>
    %102 = vector.multi_reduction <add>, %101, %cst_44 [1] : vector<8x128xf32> to vector<8xf32>
    %103 = vector.shape_cast %102 : vector<8xf32> to vector<8x1xf32>
    %cst_45 = arith.constant 1.280000e+02 : f32
    %104 = vector.broadcast %cst_45 : f32 to vector<8x1xf32>
    %105 = arith.divf %103, %104 : vector<8x1xf32>
    %106 = vector.broadcast %105 : vector<8x1xf32> to vector<8x128xf32>
    %107 = arith.subf %101, %106 : vector<8x128xf32>
    %108 = arith.mulf %107, %107 : vector<8x128xf32>
    %cst_46 = arith.constant dense<0.000000e+00> : vector<8xf32>
    %109 = vector.multi_reduction <add>, %108, %cst_46 [1] : vector<8x128xf32> to vector<8xf32>
    %110 = vector.shape_cast %109 : vector<8xf32> to vector<8x1xf32>
    %cst_47 = arith.constant 1.280000e+02 : f32
    %111 = vector.broadcast %cst_47 : f32 to vector<8x1xf32>
    %112 = arith.divf %110, %111 : vector<8x1xf32>
    %cst_48 = arith.constant 9.99999997E-7 : f32
    %113 = vector.broadcast %cst_48 : f32 to vector<8x1xf32>
    %114 = arith.addf %112, %113 : vector<8x1xf32>
    %115 = math.rsqrt %114 : vector<8x1xf32>
    %116 = vector.broadcast %115 : vector<8x1xf32> to vector<8x128xf32>
    %117 = arith.mulf %107, %116 : vector<8x128xf32>
    %118 = vector.broadcast %4 : vector<1x128xf32> to vector<8x128xf32>
    %119 = arith.mulf %117, %118 : vector<8x128xf32>
    %120 = vector.broadcast %5 : vector<1x128xf32> to vector<8x128xf32>
    %121 = arith.addf %119, %120 : vector<8x128xf32>
    %122 = arith.truncf %121 : vector<8x128xf32> to vector<8x128xbf16>
    %c0_49 = arith.constant 0 : index
    %c0_50 = arith.constant 0 : index
    %123 = vector.load %arg10[%c0_49, %c0_50] : memref<128x256xbf16, #tpu.memory_space<vmem>>, vector<128x256xbf16>
    %cst_51 = arith.constant dense<0.000000e+00> : vector<8x256xf32>
    %124 = tpu.matmul %122, %123, %cst_51 {dimension_numbers = #tpu.dot_dimension_numbers<[1], [0], [0], [1], [0, 0, 1, 1], [], []>} : vector<8x128xbf16>, vector<128x256xbf16>, vector<8x256xf32> -> vector<8x256xf32>
    %125 = vector.broadcast %8 : vector<1x256xf32> to vector<8x256xf32>
    %126 = arith.addf %124, %125 : vector<8x256xf32>
    %cst_52 = arith.constant 5.000000e-01 : f32
    %127 = vector.broadcast %cst_52 : f32 to vector<8x256xf32>
    %128 = arith.mulf %127, %126 : vector<8x256xf32>
    %cst_53 = arith.constant 0.707106769 : f32
    %129 = vector.broadcast %cst_53 : f32 to vector<8x256xf32>
    %130 = arith.mulf %126, %129 : vector<8x256xf32>
    %131 = math.erf %130 : vector<8x256xf32>
    %cst_54 = arith.constant 1.000000e+00 : f32
    %132 = vector.broadcast %cst_54 : f32 to vector<8x256xf32>
    %133 = arith.addf %132, %131 : vector<8x256xf32>
    %134 = arith.mulf %128, %133 : vector<8x256xf32>
    %135 = arith.truncf %134 : vector<8x256xf32> to vector<8x256xbf16>
    %c0_55 = arith.constant 0 : index
    %c0_56 = arith.constant 0 : index
    %136 = vector.load %arg12[%c0_55, %c0_56] : memref<256x128xbf16, #tpu.memory_space<vmem>>, vector<256x128xbf16>
    %cst_57 = arith.constant dense<0.000000e+00> : vector<8x128xf32>
    %137 = tpu.matmul %135, %136, %cst_57 {dimension_numbers = #tpu.dot_dimension_numbers<[1], [0], [0], [1], [0, 0, 1, 1], [], []>} : vector<8x256xbf16>, vector<256x128xbf16>, vector<8x128xf32> -> vector<8x128xf32>
    %138 = vector.broadcast %9 : vector<1x128xf32> to vector<8x128xf32>
    %139 = arith.addf %137, %138 : vector<8x128xf32>
    %140 = arith.addf %139, %101 : vector<8x128xf32>
    %141 = vector.shape_cast %140 : vector<8x128xf32> to vector<1x8x128xf32>
    %c0_58 = arith.constant 0 : index
    %c0_59 = arith.constant 0 : index
    %c0_60 = arith.constant 0 : index
    %142 = vector.load %arg14[%c0_58, %c0_59, %c0_60] : memref<1x8x128xf32, #tpu.memory_space<vmem>>, vector<1x8x128xf32>
    tpu.vector_store %arg14[%c0_58, %c0_59, %c0_60], %141 {strides = array<i32>} : memref<1x8x128xf32, #tpu.memory_space<vmem>>, vector<1x8x128xf32>,
    return
  }
  func.func @transform_0(%arg0: i32) -> (i32, i32, i32) {
    %c0_i32 = arith.constant 0 : i32
    %c0_i32_0 = arith.constant 0 : i32
    %c0_i32_1 = arith.constant 0 : i32
    return %arg0, %c0_i32, %c0_i32_0 : i32, i32, i32
  }
  func.func @transform_1(%arg0: i32) -> (i32, i32) {
    %c0_i32 = arith.constant 0 : i32
    %c0_i32_0 = arith.constant 0 : i32
    %c0_i32_1 = arith.constant 0 : i32
    return %c0_i32, %c0_i32_0 : i32, i32
  }
  func.func @transform_2(%arg0: i32) -> (i32, i32) {
    %c0_i32 = arith.constant 0 : i32
    %c0_i32_0 = arith.constant 0 : i32
    %c0_i32_1 = arith.constant 0 : i32
    return %c0_i32, %c0_i32_0 : i32, i32
  }
  func.func @transform_3(%arg0: i32) -> (i32, i32) {
    %c0_i32 = arith.constant 0 : i32
    %c0_i32_0 = arith.constant 0 : i32
    %c0_i32_1 = arith.constant 0 : i32
    return %c0_i32, %c0_i32_0 : i32, i32
  }
  func.func @transform_4(%arg0: i32) -> (i32, i32) {
    %c0_i32 = arith.constant 0 : i32
    %c0_i32_0 = arith.constant 0 : i32
    %c0_i32_1 = arith.constant 0 : i32
    return %c0_i32, %c0_i32_0 : i32, i32
  }
  func.func @transform_5(%arg0: i32) -> (i32, i32) {
    %c0_i32 = arith.constant 0 : i32
    %c0_i32_0 = arith.constant 0 : i32
    %c0_i32_1 = arith.constant 0 : i32
    return %c0_i32, %c0_i32_0 : i32, i32
  }
  func.func @transform_6(%arg0: i32) -> (i32, i32) {
    %c0_i32 = arith.constant 0 : i32
    %c0_i32_0 = arith.constant 0 : i32
    %c0_i32_1 = arith.constant 0 : i32
    return %c0_i32, %c0_i32_0 : i32, i32
  }
  func.func @transform_7(%arg0: i32) -> (i32, i32) {
    %c0_i32 = arith.constant 0 : i32
    %c0_i32_0 = arith.constant 0 : i32
    %c0_i32_1 = arith.constant 0 : i32
    return %c0_i32, %c0_i32_0 : i32, i32
  }
  func.func @transform_8(%arg0: i32) -> (i32, i32) {
    %c0_i32 = arith.constant 0 : i32
    %c0_i32_0 = arith.constant 0 : i32
    %c0_i32_1 = arith.constant 0 : i32
    return %c0_i32, %c0_i32_0 : i32, i32
  }
  func.func @transform_9(%arg0: i32) -> (i32, i32) {
    %c0_i32 = arith.constant 0 : i32
    %c0_i32_0 = arith.constant 0 : i32
    %c0_i32_1 = arith.constant 0 : i32
    return %c0_i32, %c0_i32_0 : i32, i32
  }
  func.func @transform_10(%arg0: i32) -> (i32, i32) {
    %c0_i32 = arith.constant 0 : i32
    %c0_i32_0 = arith.constant 0 : i32
    %c0_i32_1 = arith.constant 0 : i32
    return %c0_i32, %c0_i32_0 : i32, i32
  }
  func.func @transform_11(%arg0: i32) -> (i32, i32) {
    %c0_i32 = arith.constant 0 : i32
    %c0_i32_0 = arith.constant 0 : i32
    %c0_i32_1 = arith.constant 0 : i32
    return %c0_i32, %c0_i32_0 : i32, i32
  }
  func.func @transform_12(%arg0: i32) -> (i32, i32) {
    %c0_i32 = arith.constant 0 : i32
    %c0_i32_0 = arith.constant 0 : i32
    %c0_i32_1 = arith.constant 0 : i32
    return %c0_i32, %c0_i32_0 : i32, i32
  }
  func.func @transform_13(%arg0: i32) -> (i32, i32, i32) {
    %c0_i32 = arith.constant 0 : i32
    %c0_i32_0 = arith.constant 0 : i32
    %c0_i32_1 = arith.constant 0 : i32
    return %arg0, %c0_i32, %c0_i32_0 : i32, i32, i32
  }
}

</mosaic_0001>

<bundles_post_ra>
// kernel: tpu_custom_call.1
= control target key start
LH: loop header
LB: loop body
LE: loop exit
PB: predicated region body
PF: predicated region fallthrough
CT: control target
= control target key end

     0   :  { %s3253_s0 = inlined_call_operand.hbm [shape: f32[2,8,128], index: 0, kind: input, shape index: {}]   ;;  %s3254_s1 = inlined_call_operand.vmem [shape: f32[1,128], index: 1, kind: input, shape index: {}]   ;;  %s3255_s2 = inlined_call_operand.vmem [shape: f32[1,128], index: 2, kind: input, shape index: {}]   ;;  %s3256_s3 = inlined_call_operand.hbm [shape: bf16[128,384], index: 3, kind: input, shape index: {}]   ;;  %s3257_s4 = inlined_call_operand.vmem [shape: f32[1,384], index: 4, kind: input, shape index: {}]   ;;  %s3258_s5 = inlined_call_operand.hbm [shape: bf16[128,128], index: 5, kind: input, shape index: {}]   ;;  %s3259_s6 = inlined_call_operand.vmem [shape: f32[1,128], index: 6, kind: input, shape index: {}]   ;;  %s3260_s7 = inlined_call_operand.vmem [shape: f32[1,128], index: 7, kind: input, shape index: {}]   ;;  %s3261_s8 = inlined_call_operand.vmem [shape: f32[1,128], index: 8, kind: input, shape index: {}]   ;;  %s3262_s9 = inlined_call_operand.hbm [shape: bf16[128,256], index: 9, kind: input, shape index: {}]   ;;  %s3263_s10 = inlined_call_operand.vmem [shape: f32[1,256], index: 10, kind: input, shape index: {}]   ;;  %s3264_s11 = inlined_call_operand.hbm [shape: bf16[256,128], index: 11, kind: input, shape index: {}]   ;;  %s3265_s12 = inlined_call_operand.vmem [shape: f32[1,128], index: 12, kind: input, shape index: {}]   ;;  %s3266_s13 = inlined_call_operand.hbm [shape: f32[2,8,128], index: 13, kind: output, shape index: {}]  }
   0x1   :  { %3271 = sst [smem:[#allocation16_spill]] %s3256_s3 }
   0x2   :  { %3272 = sst [smem:[#allocation17_spill]] %s3260_s7 }
   0x3   :  { %3273 = sst [smem:[#allocation18_spill]] %s3261_s8 }
   0x4   :  { %3274 = sst [smem:[#allocation19_spill]] %s3263_s10 }
   0x5   :  { %3275 = sst [smem:[#allocation20_spill]] %s3265_s12 }
   0x6   :  { %3276 = sst [smem:[#allocation21_spill]] %s3266_s13 }
   0x7   :  { %18 = vsyncpa [#allocation3], 0 }
   0x8   :  { %20 = vsyncpa [#allocation3 + $0x1], 0 }
   0x9   :  { %21 = vsyncpa [#allocation6], 0 }
   0xa   :  { %22 = vsyncpa [#allocation9], 0 }
   0xb   :  { %23 = vsyncpa [#allocation4], 0 }
   0xc   :  { %25 = vsyncpa [#allocation4 + $0x1], 0  ;;  %s2826_s25 = smov 0   ;;  %s2828_s26 = smov 0  }
   0xd   :  { %s2830_s27 = smov 0   ;;  %s2832_s28 = smov 0  }
   0xe LB: > { %s2738_s29 = smov [#allocation5]   ;;  %s2847_s14 = sadd.s32 4294967295, %s2736_s28   ;;  %s2736_s28 = sphi %s2832_s28, %s3303_s28   ;;  %s2732_s27 = sphi %s2830_s27, %s3302_s27   ;;  %s2728_s26 = sphi %s2828_s26, %s3301_s26   ;;  %s2724_s25 = sphi %s2826_s25, %s3300_s25  }
   0xf   : > { %s358_s30 = sshll.u32 %s2738_s29, 4  ;;  %p2080_p0 = scmp.ge.s32.totalorder %s2736_s28, 1  ;;  %s2852_s30 = int_to_ptr.vmem [resolvable:$true] %s358_s30 }
  0x10   : > { %p3268_p1 = scmp.eq.s32.totalorder %s2847_s14, 0  ;;  %p340_p2 = scmp.lt.s32.totalorder %s2736_s28, 3 }
  0x11   : > { %s2739_s16 = smov [#allocation8]   ;;  %s2740_s19 = smov [#allocation7]  }
  0x12   : > { %p2854_p3 = pnand %p2080_p0, %p340_p2  ;;  %s396_s17 = sshll.u32 %s2739_s16, 4  ;;  %s2867_s17 = int_to_ptr.vmem [resolvable:$true] %s396_s17 }
  0x13   : > { %s2869_s20 = sshll.u32 %s2740_s19, 4  ;;  %s3279_s3 = sld [smem:[#allocation16_spill]]  ;;  %s375_s20 = int_to_ptr.vmem [resolvable:$true] %s2869_s20 }
  0x14   : > { %s3277_s15 = scalar_select %p2854_p3, 1, 0 }
  0x15   : > { %p2337_p5 = pneg %p2854_p3 }
  0x17   : > { %p2863_p6 = pnand %p2337_p5, %p3268_p1 }
  0x19   : > { %s2520_s23 = scalar_lea.hbm %s3279_s3, 3072  ;;  %p2879_p8 = pneg %p2863_p6 }
  0x1a   : > { %p2521_p7 = scmp.ne.s32.totalorder %s3279_s3, %s2520_s23  ;;  %p2527_p11 = scmp.lt.u32.totalorder %s2520_s23, %s3279_s3 }
  0x1c   : > { %p2523_p9 = pnand %p2879_p8, %p2521_p7 }
  0x1e   : > { %p2524_p10 = pneg %p2523_p9 }
  0x20   : > { %p2529_p12 = pnand %p2527_p11, %p2524_p10 }
  0x22   : > { %2532 = shalt.err (!%p2529_p12)
}
  0x23   : > { %s2533_s21 = scalar_lea.vmem %s2852_s30, 3072  ;;  %p2541_p5 = scmp.lt.s32.totalorder %s2852_s30, %s2852_s30 }
  0x24   : > { %p2534_p13 = scmp.ne.s32.totalorder %s2852_s30, %s2533_s21  ;;  %p2542_p4 = scmp.lt.s32.totalorder %s2533_s21, %s2533_s21 }
  0x26   : > { %p2536_p0 = pnand %p2534_p13, %p2879_p8  ;;  %p2543_p7 = por %p2542_p4, %p2541_p5 }
  0x28   : > { %p2537_p2 = pneg %p2536_p0 }
  0x2a   : > { %p2544_p9 = pnand %p2543_p7, %p2537_p2 }
  0x2c   : > { %2547 = shalt.err (!%p2544_p9)
}
  0x2d   : > { %s2741_s22 = smov 192   ;;  %s2742_s13 = smov 12  }
  0x2e   : > { %2340 = dma.hbm_to_vmem [thread:$0]  (!%p2863_p6), %s3279_s3, 3072, %s2852_s30, [#allocation6], %s2741_s22, %s2741_s22, %s2742_s13  }
  0x2f   : > { %s2548_s12 = scalar_lea.hbm %s3262_s9, 2048 }
  0x30   : > { %p2549_p4 = scmp.ne.s32.totalorder %s3262_s9, %s2548_s12  ;;  %p2555_p12 = scmp.lt.u32.totalorder %s2548_s12, %s3262_s9 }
  0x32   : > { %p2551_p10 = pnand %p2549_p4, %p2879_p8 }
  0x34   : > { %p2552_p11 = pneg %p2551_p10 }
  0x36   : > { %p2557_p13 = pnand %p2555_p12, %p2552_p11 }
  0x38   : > { %2560 = shalt.err (!%p2557_p13)
}
  0x39   : > { %s2561_s30 = scalar_lea.vmem %s2867_s17, 2048  ;;  %p2569_p7 = scmp.lt.s32.totalorder %s2867_s17, %s2867_s17 }
  0x3a   : > { %p2562_p0 = scmp.ne.s32.totalorder %s2867_s17, %s2561_s30  ;;  %p2570_p9 = scmp.lt.s32.totalorder %s2561_s30, %s2561_s30 }
  0x3c   : > { %p2564_p2 = pnand %p2562_p0, %p2879_p8  ;;  %p2571_p4 = por %p2570_p9, %p2569_p7 }
  0x3e   : > { %p2565_p5 = pneg %p2564_p2 }
  0x40   : > { %p2572_p10 = pnand %p2571_p4, %p2565_p5 }
  0x42   : > { %2575 = shalt.err (!%p2572_p10)
}
  0x43   : > { %s2743_s8 = smov 128   ;;  %s2744_s7 = smov 8  }
  0x44   : > { %2346 = dma.hbm_to_vmem [thread:$0]  (!%p2863_p6), %s3262_s9, 2048, %s2867_s17, [#allocation9], %s2743_s8, %s2743_s8, %s2744_s7  }
  0x45   : > { %s2576_s23 = scalar_lea.hbm %s3258_s5, 1024 }
  0x46   : > { %p2577_p11 = scmp.ne.s32.totalorder %s3258_s5, %s2576_s23  ;;  %p2583_p0 = scmp.lt.u32.totalorder %s2576_s23, %s3258_s5 }
  0x48   : > { %p2579_p12 = pnand %p2577_p11, %p2879_p8 }
  0x4a   : > { %p2580_p13 = pneg %p2579_p12 }
  0x4c   : > { %p2585_p2 = pnand %p2583_p0, %p2580_p13 }
  0x4e   : > { %2588 = shalt.err (!%p2585_p2)
}
  0x4f   : > { %s2589_s30 = scalar_lea.vmem %s375_s20, 1024  ;;  %p2597_p4 = scmp.lt.s32.totalorder %s375_s20, %s375_s20 }
  0x50   : > { %p2590_p5 = scmp.ne.s32.totalorder %s375_s20, %s2589_s30  ;;  %p2598_p10 = scmp.lt.s32.totalorder %s2589_s30, %s2589_s30 }
  0x52   : > { %p2592_p7 = pnand %p2590_p5, %p2879_p8  ;;  %p2599_p1 = por %p2598_p10, %p2597_p4 }
  0x54   : > { %p2593_p9 = pneg %p2592_p7 }
  0x56   : > { %p2600_p3 = pnand %p2599_p1, %p2593_p9 }
  0x58   : > { %2603 = shalt.err (!%p2600_p3)
}
  0x59   : > { %s2745_s17 = smov 64   ;;  %s2746_s8 = smov 4  }
  0x5a   : > { %2343 = dma.hbm_to_vmem [thread:$0]  (!%p2863_p6), %s3258_s5, 1024, %s375_s20, [#allocation6], %s2745_s17, %s2745_s17, %s2746_s8  }
  0x5b   : > { %s2747_s12 = smov [#allocation10]   ;;  %s2604_s24 = scalar_lea.hbm %s3264_s11, 2048 }
  0x5c   : > { %s412_s22 = sshll.u32 %s2747_s12, 4  ;;  %p2605_p1 = scmp.ne.s32.totalorder %s3264_s11, %s2604_s24  ;;  %s413_s22 = int_to_ptr.vmem [resolvable:$true] %s412_s22 }
  0x5d   : > { %p2611_p12 = scmp.lt.u32.totalorder %s2604_s24, %s3264_s11 }
  0x5e   : > { %p2607_p3 = pnand %p2605_p1, %p2879_p8 }
  0x60   : > { %p2608_p11 = pneg %p2607_p3 }
  0x62   : > { %p2613_p13 = pnand %p2611_p12, %p2608_p11 }
  0x64   : > { %2616 = shalt.err (!%p2613_p13)
}
  0x65   : > { %s2617_s20 = scalar_lea.vmem %s413_s22, 2048  ;;  %p2625_p7 = scmp.lt.s32.totalorder %s413_s22, %s413_s22 }
  0x66   : > { %p2618_p0 = scmp.ne.s32.totalorder %s413_s22, %s2617_s20  ;;  %p2626_p9 = scmp.lt.s32.totalorder %s2617_s20, %s2617_s20 }
  0x68   : > { %p2620_p2 = pnand %p2618_p0, %p2879_p8  ;;  %p2627_p4 = por %p2626_p9, %p2625_p7 }
  0x6a   : > { %p2621_p5 = pneg %p2620_p2 }
  0x6c   : > { %p2628_p10 = pnand %p2627_p4, %p2621_p5 }
  0x6e   : > { %2631 = shalt.err (!%p2628_p10)
}
  0x6f   : > { %2349 = dma.hbm_to_vmem [thread:$0]  (!%p2863_p6), %s3264_s11, 2048, %s413_s22, [#allocation9], %s2745_s17, %s2745_s17, %s2746_s8  }
  0x70   : > { %s2079_s16 = sadd.s32 4294967294, %s2736_s28   ;;  %s2962_s18 = sadd.s32 1, %s2736_s28  }
  0x71   : > { %s35_s12 = ssub.s32 %s2736_s28, %s2962_s18  ;;  %s38_s13 = sadd.s32 1, %s2732_s27 }
  0x72   : > { %p36_p8 = scmp.eq.s32.totalorder %s35_s12, 0  ;;  %p45_p1 = scmp.ne.s32.totalorder %s2732_s27, %s2728_s26 }
  0x73   : > { %p46_p3 = scmp.eq.s32.totalorder %s2736_s28, 0  ;;  %p51_p11 = scmp.ne.s32.totalorder %s2728_s26, %s2724_s25 }
  0x74   : > { %s2973_s23 = scalar_select %p36_p8, %s2732_s27, %s38_s13  }
  0x75   : > { %p2975_p12 = por %p46_p3, %p45_p1  ;;  %p3282_p13 = scmp.eq.s32.totalorder %s2847_s14, 0 }
  0x76   : > { %p327_p0 = scmp.eq.s32.totalorder %s2847_s14, 1  ;;  %p333_p2 = scmp.eq.s32.totalorder %s2079_s16, 1 }
  0x77   : > { %p2981_p6 = por %p3282_p13, %p51_p11  ;;  %p2362_p5 = scmp.lt.s32.totalorder %s2736_s28, 2 }
  0x78   : > { %s429_s8 = sand.u32 1, %s2732_s27   ;;  %p2988_p7 = por %p327_p0, %p45_p1 }
  0x79   : > { %p2992_p9 = por %p333_p2, %p51_p11  ;;  %s2086_s19 = sshll.u32 %s429_s8, 3 }
  0x7a   : > { %s3284_s22 = scalar_select %p2988_p7, 1, 0 }
  0x7b   : > { %s3285_s29 = scalar_select %p2992_p9, 1, 0 }
  0x7c   : > { %s2087_s21 = sshll.u32 %s2736_s28, 7  ;;  %s433_s10 = scalar_lea.vmem [#allocation2], %s2086_s19 }
  0x7d   : > { %s3000_s7 = scalar_lea.hbm %s3253_s0, %s2087_s21  ;;  %s440_s16 = sshll.u32 %s433_s10, 4  ;;  %s3002_s16 = int_to_ptr.vmem [resolvable:$true] %s440_s16 }
  0x7e   : > { %p3006_p4 = pnand %p2362_p5, %p2975_p12  ;;  %s430_s13 = scalar_lea.sflag [#allocation3], %s429_s8 }
  0x7f   : > { %s2632_s3 = scalar_lea.hbm %s3000_s7, 128  ;;  %s2637_s30 = scalar_lea.hbm %s3253_s0, 256 }
  0x80   : > { %p2633_p10 = scmp.ne.s32.totalorder %s3000_s7, %s2632_s3  ;;  %p2634_p8 = pneg %p3006_p4 }
  0x81   : > { %p2638_p11 = scmp.lt.u32.totalorder %s3000_s7, %s3253_s0  ;;  %p2639_p12 = scmp.lt.u32.totalorder %s2637_s30, %s2632_s3 }
  0x82   : > { %p2635_p1 = pnand %p2634_p8, %p2633_p10  ;;  %p2641_p0 = scmp.lt.u32.totalorder %s2632_s3, %s3000_s7 }
  0x83   : > { %p2640_p13 = por %p2639_p12, %p2638_p11 }
  0x84   : > { %p2636_p3 = pneg %p2635_p1 }
  0x85   : > { %p2642_p2 = por %p2641_p0, %p2640_p13 }
  0x87   : > { %p2643_p5 = pnand %p2642_p2, %p2636_p3 }
  0x89   : > { %2646 = shalt.err (!%p2643_p5)
}
  0x8a   : > { %s2647_s8 = scalar_lea.vmem %s3002_s16, 128  ;;  %s2748_s10 = smov [#allocation2]  }
  0x8b   : > { %p2648_p10 = scmp.ne.s32.totalorder %s3002_s16, %s2647_s8  ;;  %s2652_s19 = sshll.u32 %s2748_s10, 4  ;;  %s2653_s19 = int_to_ptr.vmem [resolvable:$false] %s2652_s19 }
  0x8c   : > { %s2654_s21 = scalar_lea.vmem %s2653_s19, 256  ;;  %p2655_p7 = scmp.lt.s32.totalorder %s3002_s16, %s2653_s19 }
  0x8d   : > { %p2650_p1 = pnand %p2648_p10, %p2634_p8  ;;  %p2656_p11 = scmp.lt.s32.totalorder %s2654_s21, %s2647_s8 }
  0x8f   : > { %p2651_p9 = pneg %p2650_p1  ;;  %p2657_p12 = por %p2656_p11, %p2655_p7 }
  0x91   : > { %p2658_p13 = pnand %p2657_p12, %p2651_p9 }
  0x93   : > { %2661 = shalt.err (!%p2658_p13)
}
  0x94   : > { %2353 = dma.hbm_to_vmem [thread:$0]  (!%p3006_p4), %s3000_s7, 128, %s3002_s16, %s430_s13  }
  0x95   : > { %p3287_p3 = scmp.ne.s32.totalorder %s3277_s15, 0 }
  0x96   : > { %s3038_s3 = sand.u32 (!%p3287_p3), 1, %s2728_s26  }
  0x97   : > { %449 = sbr.rel (%p3287_p3) target bundleno = 4140 (0x102c), region = 72  ;;  %s2089_s30 = sshll.u32 (!%p3287_p3), %s3038_s3, 3 }
  0x98   : > { %s452_s24 = scalar_lea.sflag (!%p3287_p3), [#allocation3], %s3038_s3  ;;  %s455_s20 = scalar_lea.vmem (!%p3287_p3), [#allocation2], %s2089_s30 }
  0x9e   : > { %2707 = dma.done.wait (%p2981_p6), %s452_s24, 128  }
  0x9f   : > { %2709 = vsyncadd (%p2981_p6), %s452_s24, 4294967168  ;;  %p3288_p7 = scmp.eq.s32.totalorder %s2847_s14, 0 }
  0xa1   : > { %2711 = dma.done.wait (%p3288_p7), [#allocation6], 4096   ;;  %p3289_p9 = pmov %p3288_p7 }
  0xa2   : > { %p3290_p4 = pmov %p3288_p7 }
  0xa3   : > { %2713 = vsyncadd (%p3289_p9), [#allocation6], 4294963200 }
  0xa4   : > { %2715 = dma.done.wait (%p3290_p4), [#allocation9], 4096   ;;  %p3291_p8 = pmov %p3290_p4 }
  0xa5   : > { %v3056_v0 = vld [vmem:[%s455_s20] sm:$0xff]  ;;  %v2418_v2 = vld [vmem:[#allocation5] ss:$12 sps:$4 sm:$0xff]   ;;  %v2749_v3 = vmov 0.0   ;;  %v2750_v25 = vmov 0   ;;  %vm2751_vm0 = vmmov 0   ;;  %v584_v41 = vlaneseq }
  0xa6   : > { %2717 = vsyncadd (%p3291_p8), [#allocation9], 4294963200  ;;  %524 = vadd.xlane.f32.xlu0 %v3056_v0  ;;  %v2416_v1 = vld [vmem:[#allocation5 + $0x4] ss:$12 sps:$4 sm:$0xff]   ;;  %2237 = vmatprep.subr.bf16.mxu1 %v2749_v3  ;;  %v2419_v4 = vld [vmem:[#allocation5 + $0x8] ss:$12 sps:$4 sm:$0xff]  }
  0xa7   : > { %v2420_v5 = vld [vmem:[#allocation5 + $0x1c] ss:$12 sps:$4 sm:$0xff]   ;;  %v2422_v6 = vld [vmem:[#allocation5 + $0x18] ss:$12 sps:$4 sm:$0xff]   ;;  %727 = vmatprep.subr.bf16.mxu0 %v2416_v1  ;;  %v2423_v7 = vld [vmem:[#allocation5 + $0x20] ss:$12 sps:$4 sm:$0xff]   ;;  %2238 = vmatpush3.bf16.msra.mxu1 %v2419_v4 }
  0xa8   : > { %v2424_v8 = vld [vmem:[#allocation5 + $0x34] ss:$12 sps:$4 sm:$0xff]   ;;  %728 = vmatpush1.bf16.msra.mxu0 %v2418_v2  ;;  %2239 = vmatprep.subr.bf16.mxu1 %v2749_v3  ;;  %v2426_v13 = vld [vmem:[#allocation5 + $0x30] ss:$12 sps:$4 sm:$0xff]   ;;  %v2427_v14 = vld [vmem:[#allocation5 + $0x38] ss:$12 sps:$4 sm:$0xff]  }
  0xa9   : > { %729 = vmatprep.subr.bf16.mxu0 %v2420_v5  ;;  %v2428_v15 = vld [vmem:[#allocation5 + $0x4c] ss:$12 sps:$4 sm:$0xff]   ;;  %v2430_v16 = vld [vmem:[#allocation5 + $0x48] ss:$12 sps:$4 sm:$0xff]   ;;  %v2431_v17 = vld [vmem:[#allocation5 + $0x50] ss:$12 sps:$4 sm:$0xff]   ;;  %759 = vmatprep.mubr.bf16.mxu0 %v2750_v25 }
  0xaa   : > { %v2432_v18 = vld [vmem:[#allocation5 + $0x64] ss:$12 sps:$4 sm:$0xff]   ;;  %v2434_v19 = vld [vmem:[#allocation5 + $0x60] ss:$12 sps:$4 sm:$0xff]   ;;  %v2435_v20 = vld [vmem:[#allocation5 + $0x68] ss:$12 sps:$4 sm:$0xff]   ;;  %2253 = vmatprep.mubr.msk.bf16.mxu1 %vm2751_vm0, %v2749_v3 }
  0xab   : > { %2240 = vmatpush3.bf16.msra.mxu1 %v2423_v7  ;;  %v2436_v21 = vld [vmem:[#allocation5 + $0x7c] ss:$12 sps:$4 sm:$0xff]   ;;  %v2438_v22 = vld [vmem:[#allocation5 + $0x78] ss:$12 sps:$4 sm:$0xff]   ;;  %v2439_v23 = vld [vmem:[#allocation5 + $0x80] ss:$12 sps:$4 sm:$0xff]  }
  0xac   : > { %730 = vmatpush1.bf16.msra.mxu0 %v2422_v6  ;;  %2241 = vmatprep.subr.bf16.mxu1 %v2749_v3  ;;  %v2440_v24 = vld [vmem:[#allocation5 + $0x94] ss:$12 sps:$4 sm:$0xff]   ;;  %v2442_v26 = vld [vmem:[#allocation5 + $0x90] ss:$12 sps:$4 sm:$0xff]   ;;  %v2443_v27 = vld [vmem:[#allocation5 + $0x98] ss:$12 sps:$4 sm:$0xff]  }
  0xad   : > { %731 = vmatprep.subr.bf16.mxu0 %v2424_v8  ;;  %v2444_v28 = vld [vmem:[#allocation5 + $0xac] ss:$12 sps:$4 sm:$0xff]   ;;  %v2446_v29 = vld [vmem:[#allocation5 + $0xa8] ss:$12 sps:$4 sm:$0xff]   ;;  %v2447_v30 = vld [vmem:[#allocation5 + $0xb0] ss:$12 sps:$4 sm:$0xff]  }
  0xae   : > { %v2095_v35 = vld [vmem:[%s3254_s1] ss:$0 sm:$0xff]  ;;  %v3083_v42 = vshrl.u32 %v584_v41, 7  ;;  %vm808_vm1 = vcmask 261120   ;;  %s2752_s8 = smov 96   ;;  %vm885_vm2 = vcmask 64512  }
  0xaf   : > { %2242 = vmatpush3.bf16.msra.mxu1 %v2427_v14  ;;  %v2096_v37 = vld [vmem:[%s3255_s2] ss:$0 sm:$0xff]  ;;  %s2753_s10 = smov 64   ;;  %s2754_s19 = smov 32   ;;  %vm1479_vm3 = vcmask 523264   ;;  %vm1481_vm4 = vcmask 785408  }
  0xb0   : > { %732 = vmatpush1.bf16.msra.mxu0 %v2426_v13  ;;  %2243 = vmatprep.subr.bf16.mxu1 %v2749_v3  ;;  %v590_v43 = vsub.s32 1, %v3083_v42  ;;  %v520_v44 = vld [vmem:[%s3257_s4] sm:$0x7]  ;;  %v586_v45 = vsub.s32 0, %v3083_v42  ;;  %v594_v46 = vsub.s32 2, %v3083_v42  ;;  %s3292_s17 = sld [smem:[#allocation17_spill]] }
  0xb1   : > { %733 = vmatprep.subr.bf16.mxu0 %v2428_v15  ;;  %s3293_s12 = sld [smem:[#allocation18_spill]]  ;;  %s3295_s24 = sld [smem:[#allocation20_spill]] }
  0xb2   : > { %v591_v47 = vrot.slane %v520_v44, %v590_v43  ;;  %v587_v50 = vrot.slane %v520_v44, %v586_v45  ;;  %v595_v53 = vrot.slane %v520_v44, %v594_v46  ;;  %s2178_s20 = sshll.u32 %s2847_s14, 7  ;;  %s513_s15 = scalar_lea.vmem [#allocation11], %s2089_s30 }
  0xb3   : > { %2244 = vmatpush3.bf16.msra.mxu1 %v2431_v17  ;;  %p3297_p0 = scmp.ne.s32.totalorder %s3284_s22, 0  ;;  %s2755_s14 = smov [#allocation11]  }
  0xb4   : > { %734 = vmatpush1.bf16.msra.mxu0 %v2430_v16  ;;  %2245 = vmatprep.subr.bf16.mxu1 %v2749_v3  ;;  %s2666_s30 = sshll.u32 %s2755_s14, 4  ;;  %s2667_s30 = int_to_ptr.vmem [resolvable:$false] %s2666_s30 }
  0xb5   : > { %735 = vmatprep.subr.bf16.mxu0 %v2432_v18 }
  0xb7   : > { %2246 = vmatpush3.bf16.msra.mxu1 %v2435_v20 }
  0xb8   : > { %736 = vmatpush1.bf16.msra.mxu0 %v2434_v19  ;;  %2247 = vmatprep.subr.bf16.mxu1 %v2749_v3 }
  0xb9   : > { %737 = vmatprep.subr.bf16.mxu0 %v2436_v21 }
  0xbb   : > { %2248 = vmatpush3.bf16.msra.mxu1 %v2439_v23 }
  0xbc   : > { %738 = vmatpush1.bf16.msra.mxu0 %v2438_v22  ;;  %2249 = vmatprep.subr.bf16.mxu1 %v2749_v3 }
  0xbd   : > { %739 = vmatprep.subr.bf16.mxu0 %v2440_v24 }
  0xbf   : > { %2250 = vmatpush3.bf16.msra.mxu1 %v2443_v27 }
  0xc0   : > { %740 = vmatpush1.bf16.msra.mxu0 %v2442_v26  ;;  %2251 = vmatprep.subr.bf16.mxu1 %v2749_v3 }
  0xc1   : > { %741 = vmatprep.subr.bf16.mxu0 %v2444_v28 }
  0xc3   : > { %2252 = vmatpush3.bf16.msra.mxu1 %v2447_v30 }
  0xc4   : > { %742 = vmatpush1.bf16.msra.mxu0 %v2446_v29  ;;  %2257 = vmatprep.subr.mxu1 %v2749_v3 }
  0xc5   : > { %2297 = vmatprep.subr.bf16.mxu0 %v2749_v3 }
 0x133   : > { %v525_v9 = vpop.xlane.xlu0 %524 }
 0x134   : > { %v527_v10 = vmul.f32 0.0078125, %v525_v9 }
 0x136   : > { %v528_v11 = vsub.f32 %v3056_v0, %v527_v10 }
 0x138   : > { %v529_v12 = vmul.f32 %v528_v11, %v528_v11 }
 0x13a   : > { %530 = vadd.xlane.f32.xlu0 %v529_v12 }
 0x1c7   : > { %v531_v31 = vpop.xlane.xlu0 %530 }
 0x1c8   : > { %v532_v32 = vmul.f32 0.0078125, %v531_v31 }
 0x1ca   : > { %v533_v33 = vadd.f32 1e-06, %v532_v32 }
 0x1cc   : > { %2496 = vrsqrt.f32 %v533_v33 }
 0x1d6   : > { %v2497_v34 = vpop.eup %2496 }
 0x1d7   : > { %v535_v36 = vmul.f32 %v2497_v34, %v528_v11 }
 0x1d9   : > { %v542_v38 = vmul.f32 %v2095_v35, %v535_v36 }
 0x1db   : > { %v549_v39 = vadd.f32 %v2096_v37, %v542_v38 }
 0x1dd   : > { %v550_v40 = vpack.c.bf16 %v549_v39, %v549_v39 }
 0x1df   : > { %760 = vmatmul.mubr.bf16.vlgmr.msra.gmra.mrb[0].mxu0 %v550_v40  ;;  %2254 = vmatmul.mubr.bf16.vlgmr.msra.gmra.mrb[0].mxu1 %v550_v40 }
 0x1e0   : > { %2259 = vmatprep.mubr.msk.f32.mxu1 %vm2751_vm0, %v2749_v3  ;;  %2313 = vmatprep.mubr.msk.bf16.mxu0 %vm2751_vm0, %v2749_v3 }
 0x2b2   : > { %v761_v48 = vpop.f32.mrb[0].mxu0  ;;  %v802_v49 = vpop.f32.mrb[0].mxu1 }
 0x2b3   : > { %v763_v51 = vpop.f32.mrb[1].mxu0  ;;  %v2255_v52 = vpop.f32.mrb[1].mxu1  ;;  %v3101_v59 = vadd.f32 %v761_v48, %v587_v50  ;;  %v3104_v60 = vadd.f32 %v802_v49, %v595_v53 }
 0x2b4   : > { %v3095_v54 = vadd.f32 %v763_v51, %v591_v47  ;;  %v765_v55 = vpop.f32.mrb[2].mxu0  ;;  %v805_v56 = vpop.f32.mrb[2].mxu1 }
 0x2b5   : > { %v766_v57 = vpop.f32.mrb[3].mxu0  ;;  %v2256_v58 = vpop.f32.mrb[3].mxu1 }
 0x2b6   : > { %972 = vrot.lane.b32.xlu0 %v3095_v54, %s2752_s8  ;;  %2258 = vmatpush3.xpose.msk.msra.mxu1 %vm808_vm1, %v3095_v54 }
 0x2b7   : > { %2262 = vmatprep.subr.mxu1 %v2749_v3 }
 0x2b9   : > { %2260 = vmatmul.mubr.msk.f32.vlgmr.msra.gmra.mrb[4].mxu1 %vm808_vm1, %v3101_v59 }
 0x2ba   : > { %2263 = vmatpush3.msra.mxu1 %v3104_v60  ;;  %2264 = vmatprep.mubr.msk.f32.mxu1 %vm2751_vm0, %v2749_v3 }
 0x2bb   : > { %2267 = vmatprep.subr.mxu1 %v2749_v3 }
 0x328   : > { %v973_v10 = vpop.permute.xlu0 %972 }
 0x38c   : > { %v881_v61 = vpop.f32.mrb[4].mxu1 }
 0x38d   : > { %v2261_v62 = vpop.f32.mrb[5].mxu1  ;;  %v886_v63 = vsel %vm885_vm2, %v881_v61, -inf }
 0x38e   : > { %887 = vmax.xlane.f32.xlu1 %v886_v63  ;;  %v2449_v63 = vld [vmem:[#allocation7 + $0x8] sm:$0xff]  }
 0x41b   : > { %v888_v1 = vpop.xlane.xlu1 %887 }
 0x41c   : > { %v889_v2 = vsub.f32 %v881_v61, %v888_v1  ;;  %v2450_v1 = vld [vmem:[#allocation7 + $0x10] sm:$0xff]  }
 0x41e   : > { %v890_v4 = vmul.f32 1.442695, %v889_v2  ;;  %v2451_v2 = vld [vmem:[#allocation7 + $0x18] sm:$0xff]  }
 0x420   : > { %2498 = vpow2.f32 %v890_v4  ;;  %v2452_v4 = vld [vmem:[#allocation7 + $0x20] sm:$0xff]  }
 0x42a   : > { %v2499_v5 = vpop.eup %2498 }
 0x42b   : > { %v892_v6 = vsel %vm885_vm2, %v2499_v5, 0.0 }
 0x42c   : > { %893 = vadd.xlane.f32.xlu1 %v892_v6  ;;  %v2455_v6 = vld [vmem:[#allocation7 + $0x38] sm:$0xff]  }
 0x43d   : > { %970 = vrot.lane.b32.xlu1 %v3101_v59, %s2752_s8 }
 0x4b9   : > { %v894_v7 = vpop.xlane.xlu1 %893 }
 0x4ba   : > { %2500 = vrcp.f32 %v894_v7 }
 0x4bd   : > { %v971_v11 = vpop.permute.xlu1 %970 }
 0x4c4   : > { %v2501_v8 = vpop.eup %2500 }
 0x4c5   : > { %v896_v9 = vmul.f32 %v2501_v8, %v2499_v5  ;;  %v2453_v5 = vld [vmem:[#allocation7 + $0x28] sm:$0xff]  }
 0x4c7   : > { %2265 = vmatmul.mubr.msk.f32.vlgmr.msra.gmra.mrb[6].mxu1 %vm885_vm2, %v896_v9 }
 0x4c8   : > { %2268 = vmatpush3.xpose.msk.msra.mxu1 %vm808_vm1, %v973_v10  ;;  %2269 = vmatprep.mubr.msk.f32.mxu1 %vm2751_vm0, %v2749_v3 }
 0x4c9   : > { %2272 = vmatprep.subr.mxu1 %v2749_v3 }
 0x4cb   : > { %2270 = vmatmul.mubr.msk.f32.vlgmr.msra.gmra.mrb[8].mxu1 %vm808_vm1, %v971_v11 }
 0x4cc   : > { %2274 = vmatprep.mubr.msk.f32.mxu1 %vm2751_vm0, %v2749_v3 }
 0x59a   : > { %v3124_v12 = vpop.f32.mrb[6].mxu1 }
 0x59b   : > { %v2266_v13 = vpop.f32.mrb[7].mxu1 }
 0x59e   : > { %v1044_v14 = vpop.f32.mrb[8].mxu1 }
 0x59f   : > { %v2271_v15 = vpop.f32.mrb[9].mxu1  ;;  %v1048_v16 = vsel %vm885_vm2, %v1044_v14, -inf }
 0x5a0   : > { %1049 = vmax.xlane.f32.xlu1 %v1048_v16 }
 0x5b1   : > { %1138 = vrot.lane.b32.xlu1 %v3095_v54, %s2753_s10 }
 0x5b5   : > { %1136 = vrot.lane.b32.xlu1 %v3101_v59, %s2753_s10 }
 0x62d   : > { %v1050_v17 = vpop.xlane.xlu1 %1049 }
 0x62e   : > { %v1051_v18 = vsub.f32 %v1044_v14, %v1050_v17 }
 0x630   : > { %v1052_v19 = vmul.f32 1.442695, %v1051_v18 }
 0x631   : > { %v1139_v26 = vpop.permute.xlu1 %1138 }
 0x632   : > { %2502 = vpow2.f32 %v1052_v19 }
 0x635   : > { %v1137_v28 = vpop.permute.xlu1 %1136 }
 0x63c   : > { %v2503_v20 = vpop.eup %2502 }
 0x63d   : > { %v1054_v21 = vsel %vm885_vm2, %v2503_v20, 0.0 }
 0x63e   : > { %1055 = vadd.xlane.f32.xlu0 %v1054_v21 }
 0x654   : > { %1060 = vrot.lane.b32.xlu0 %v3104_v60, %s2752_s8 }
 0x6cb   : > { %v1056_v22 = vpop.xlane.xlu0 %1055 }
 0x6cc   : > { %2504 = vrcp.f32 %v1056_v22  ;;  %v2456_v22 = vld [vmem:[#allocation8] ss:$8 sps:$4 sm:$0xff]  }
 0x6cf   : > { %v1061_v23 = vpop.permute.xlu0 %1060 }
 0x6d0   : > { %2273 = vmatpush3.msra.mxu1 %v1061_v23  ;;  %v2458_v23 = vld [vmem:[#allocation8 + $0x4] ss:$8 sps:$4 sm:$0xff]  }
 0x6d1   : > { %2277 = vmatprep.subr.mxu1 %v2749_v3 }
 0x6d6   : > { %v2505_v24 = vpop.eup %2504 }
 0x6d7   : > { %v1058_v27 = vmul.f32 %v2505_v24, %v2503_v20  ;;  %v2461_v24 = vld [vmem:[#allocation8 + $0x14] ss:$8 sps:$4 sm:$0xff]  }
 0x6d9   : > { %2275 = vmatmul.mubr.msk.f32.vlgmr.msra.gmra.mrb[10].mxu1 %vm885_vm2, %v1058_v27  ;;  %v2464_v27 = vld [vmem:[#allocation8 + $0x24] ss:$8 sps:$4 sm:$0xff]  }
 0x6da   : > { %2278 = vmatpush3.xpose.msk.msra.mxu1 %vm808_vm1, %v1139_v26  ;;  %2279 = vmatprep.mubr.msk.f32.mxu1 %vm2751_vm0, %v2749_v3  ;;  %v2459_v26 = vld [vmem:[#allocation8 + $0x10] ss:$8 sps:$4 sm:$0xff]  }
 0x6db   : > { %2282 = vmatprep.subr.mxu1 %v2749_v3 }
 0x6dd   : > { %2280 = vmatmul.mubr.msk.f32.vlgmr.msra.gmra.mrb[12].mxu1 %vm808_vm1, %v1137_v28  ;;  %v2462_v28 = vld [vmem:[#allocation8 + $0x20] ss:$8 sps:$4 sm:$0xff]  }
 0x6de   : > { %2284 = vmatprep.mubr.msk.f32.mxu1 %vm2751_vm0, %v2749_v3 }
 0x7ac   : > { %v1132_v29 = vpop.f32.mrb[10].mxu1 }
 0x7ad   : > { %v2276_v30 = vpop.f32.mrb[11].mxu1 }
 0x7b0   : > { %v1210_v31 = vpop.f32.mrb[12].mxu1 }
 0x7b1   : > { %v2281_v32 = vpop.f32.mrb[13].mxu1  ;;  %v1214_v33 = vsel %vm885_vm2, %v1210_v31, -inf }
 0x7b2   : > { %1215 = vmax.xlane.f32.xlu1 %v1214_v33  ;;  %v2467_v32 = vld [vmem:[#allocation8 + $0x34] ss:$8 sps:$4 sm:$0xff]   ;;  %v2465_v33 = vld [vmem:[#allocation8 + $0x30] ss:$8 sps:$4 sm:$0xff]  }
 0x7c3   : > { %1303 = vrot.lane.b32.xlu1 %v3095_v54, %s2754_s19 }
 0x7c7   : > { %1301 = vrot.lane.b32.xlu1 %v3101_v59, %s2754_s19 }
 0x83f   : > { %v1216_v34 = vpop.xlane.xlu1 %1215 }
 0x840   : > { %v1217_v35 = vsub.f32 %v1210_v31, %v1216_v34  ;;  %v2470_v34 = vld [vmem:[#allocation8 + $0x44] ss:$8 sps:$4 sm:$0xff]  }
 0x842   : > { %v1218_v36 = vmul.f32 1.442695, %v1217_v35  ;;  %v2468_v35 = vld [vmem:[#allocation8 + $0x40] ss:$8 sps:$4 sm:$0xff]  }
 0x843   : > { %v1304_v44 = vpop.permute.xlu1 %1303 }
 0x844   : > { %2506 = vpow2.f32 %v1218_v36  ;;  %v2473_v36 = vld [vmem:[#allocation8 + $0x54] ss:$8 sps:$4 sm:$0xff]  }
 0x847   : > { %v1302_v47 = vpop.permute.xlu1 %1301 }
 0x84e   : > { %v2507_v37 = vpop.eup %2506 }
 0x84f   : > { %v1220_v38 = vsel %vm885_vm2, %v2507_v37, 0.0 }
 0x850   : > { %1221 = vadd.xlane.f32.xlu0 %v1220_v38  ;;  %v2476_v38 = vld [vmem:[#allocation8 + $0x64] ss:$8 sps:$4 sm:$0xff]  }
 0x866   : > { %1225 = vrot.lane.b32.xlu0 %v3104_v60, %s2753_s10 }
 0x8dd   : > { %v1222_v39 = vpop.xlane.xlu0 %1221 }
 0x8de   : > { %2508 = vrcp.f32 %v1222_v39  ;;  %v2474_v39 = vld [vmem:[#allocation8 + $0x60] ss:$8 sps:$4 sm:$0xff]  }
 0x8e1   : > { %v1226_v40 = vpop.permute.xlu0 %1225 }
 0x8e2   : > { %2283 = vmatpush3.msra.mxu1 %v1226_v40  ;;  %v2479_v40 = vld [vmem:[#allocation8 + $0x74] ss:$8 sps:$4 sm:$0xff]  }
 0x8e3   : > { %2287 = vmatprep.subr.mxu1 %v2749_v3 }
 0x8e8   : > { %v2509_v41 = vpop.eup %2508 }
 0x8e9   : > { %v1224_v46 = vmul.f32 %v2509_v41, %v2507_v37  ;;  %v2471_v37 = vld [vmem:[#allocation8 + $0x50] ss:$8 sps:$4 sm:$0xff]  }
 0x8ea   : > { %v2477_v41 = vld [vmem:[#allocation8 + $0x70] ss:$8 sps:$4 sm:$0xff]  }
 0x8eb   : > { %2285 = vmatmul.mubr.msk.f32.vlgmr.msra.gmra.mrb[14].mxu1 %vm885_vm2, %v1224_v46  ;;  %v2481_v46 = vld [vmem:[#allocation10] sm:$0xff]  }
 0x8ec   : > { %2288 = vmatpush3.xpose.msk.msra.mxu1 %vm808_vm1, %v1304_v44  ;;  %2289 = vmatprep.mubr.msk.f32.mxu1 %vm2751_vm0, %v2749_v3  ;;  %v2480_v44 = vld [vmem:[#allocation10 + $0x40] sm:$0xff]  }
 0x8ed   : > { %2292 = vmatprep.subr.mxu1 %v2749_v3 }
 0x8ef   : > { %2290 = vmatmul.mubr.msk.f32.vlgmr.msra.gmra.mrb[16].mxu1 %vm808_vm1, %v1302_v47  ;;  %v2482_v47 = vld [vmem:[#allocation10 + $0x48] sm:$0xff]  }
 0x8f0   : > { %2294 = vmatprep.mubr.msk.f32.mxu1 %vm2751_vm0, %v2749_v3 }
 0x9be   : > { %v1297_v48 = vpop.f32.mrb[14].mxu1 }
 0x9bf   : > { %v2286_v49 = vpop.f32.mrb[15].mxu1 }
 0x9c2   : > { %v1375_v50 = vpop.f32.mrb[16].mxu1 }
 0x9c3   : > { %v2291_v51 = vpop.f32.mrb[17].mxu1  ;;  %v1379_v52 = vsel %vm885_vm2, %v1375_v50, -inf }
 0x9c4   : > { %1380 = vmax.xlane.f32.xlu0 %v1379_v52 }
 0x9da   : > { %1390 = vrot.lane.b32.xlu0 %v3104_v60, %s2754_s19  ;;  %v2448_v60 = vld [vmem:[#allocation7] sm:$0xff]  }
 0x9db   : > { %2298 = vmatpush3.bf16.msra.mxu0 %v2448_v60  ;;  %v2487_v60 = vld [vmem:[#allocation10 + $0x18] sm:$0xff]  }
 0x9dc   : > { %2299 = vmatprep.subr.bf16.mxu0 %v2749_v3 }
 0x9de   : > { %1471 = vrot.lane.b32.xlu0 %v1297_v48, %s2753_s10  ;;  %v2483_v48 = vld [vmem:[#allocation10 + $0x8] sm:$0xff]   ;;  %s3294_s10 = sld [smem:[#allocation19_spill]] }
 0x9df   : > { %2300 = vmatpush3.bf16.msra.mxu0 %v2449_v63  ;;  %v2488_v63 = vld [vmem:[#allocation10 + $0x60] sm:$0xff]  }
 0x9e0   : > { %2301 = vmatprep.subr.bf16.mxu0 %v2749_v3 }
 0x9e3   : > { %2302 = vmatpush3.bf16.msra.mxu0 %v2450_v1  ;;  %v2489_v1 = vld [vmem:[#allocation10 + $0x20] sm:$0xff]  }
 0x9e4   : > { %2303 = vmatprep.subr.bf16.mxu0 %v2749_v3 }
 0x9e7   : > { %2304 = vmatpush3.bf16.msra.mxu0 %v2451_v2  ;;  %v2490_v2 = vld [vmem:[#allocation10 + $0x68] sm:$0xff]  }
 0x9e8   : > { %2305 = vmatprep.subr.bf16.mxu0 %v2749_v3 }
 0x9eb   : > { %2306 = vmatpush3.bf16.msra.mxu0 %v2452_v4  ;;  %v2491_v4 = vld [vmem:[#allocation10 + $0x28] sm:$0xff]  }
 0x9ec   : > { %2307 = vmatprep.subr.bf16.mxu0 %v2749_v3 }
 0x9ef   : > { %2308 = vmatpush3.bf16.msra.mxu0 %v2453_v5  ;;  %v2492_v5 = vld [vmem:[#allocation10 + $0x70] sm:$0xff]  }
 0x9f0   : > { %2309 = vmatprep.subr.bf16.mxu0 %v2749_v3 }
 0xa51   : > { %v1381_v53 = vpop.xlane.xlu0 %1380 }
 0xa52   : > { %v1382_v54 = vsub.f32 %v1375_v50, %v1381_v53  ;;  %v2142_v53 = vld [vmem:[%s3292_s17] ss:$0 sm:$0xff]  ;;  %s1971_s17 = sshll.u32 %s513_s15, 4  ;;  %s3211_s17 = int_to_ptr.vmem [resolvable:$true] %s1971_s17 }
 0xa53   : > { %p2669_p10 = scmp.lt.s32.totalorder %s3211_s17, %s2667_s30 }
 0xa54   : > { %v1383_v55 = vmul.f32 1.442695, %v1382_v54 }
 0xa55   : > { %v1391_v56 = vpop.permute.xlu0 %1390 }
 0xa56   : > { %2510 = vpow2.f32 %v1383_v55  ;;  %2293 = vmatpush3.msra.mxu1 %v1391_v56  ;;  %v2143_v55 = vld [vmem:[%s3293_s12] ss:$0 sm:$0xff]  ;;  %s3296_s12 = sld [smem:[#allocation21_spill]] }
 0xa57   : > { %1728 = vmatprep.subr.bf16.mxu1 %v2458_v23 }
 0xa59   : > { %v1472_v11 = vpop.permute.xlu0 %1471 }
 0xa5c   : > { %s3209_s13 = scalar_lea.hbm %s3296_s12, %s2178_s20 }
 0xa60   : > { %v2511_v57 = vpop.eup %2510 }
 0xa61   : > { %v1385_v58 = vsel %vm885_vm2, %v2511_v57, 0.0 }
 0xa62   : > { %1386 = vadd.xlane.f32.xlu1 %v1385_v58 }
 0xa73   : > { %1467 = vrot.lane.b32.xlu1 %v1132_v29, %s2754_s19  ;;  %s2668_s19 = scalar_lea.vmem %s2667_s30, 256 }
 0xaef   : > { %v1387_v59 = vpop.xlane.xlu1 %1386 }
 0xaf0   : > { %2512 = vrcp.f32 %v1387_v59  ;;  %v2484_v59 = vld [vmem:[#allocation10 + $0x50] sm:$0xff]  }
 0xaf3   : > { %v1468_v9 = vpop.permute.xlu1 %1467 }
 0xaf4   : > { %v1478_v10 = vsel %vm808_vm1, %v3124_v12, %v1468_v9 }
 0xaf5   : > { %v1480_v13 = vsel %vm1479_vm3, %v1478_v10, %v1472_v11 }
 0xafa   : > { %v2513_v61 = vpop.eup %2512 }
 0xafb   : > { %v1389_v62 = vmul.f32 %v2513_v61, %v2511_v57  ;;  %v2485_v61 = vld [vmem:[#allocation10 + $0x10] sm:$0xff]  }
 0xafd   : > { %2295 = vmatmul.mubr.msk.f32.vlgmr.msra.gmra.mrb[18].mxu1 %vm885_vm2, %v1389_v62  ;;  %v2486_v62 = vld [vmem:[#allocation10 + $0x58] sm:$0xff]  }
 0xafe   : > { %1760 = vmatprep.mubr.bf16.mxu1 %v2750_v25  ;;  %v2454_v25 = vld [vmem:[#allocation7 + $0x30] sm:$0xff]   ;;  %1729 = vmatpush1.bf16.msra.mxu1 %v2456_v22 }
 0xaff   : > { %2310 = vmatpush3.bf16.msra.mxu0 %v2454_v25  ;;  %1730 = vmatprep.subr.bf16.mxu1 %v2461_v24  ;;  %v2493_v25 = vld [vmem:[#allocation10 + $0x30] sm:$0xff]  }
 0xb00   : > { %2311 = vmatprep.subr.bf16.mxu0 %v2749_v3  ;;  %v2133_v3 = vld [vmem:[%s3259_s6] ss:$0 sm:$0xff] }
 0xb02   : > { %1731 = vmatpush1.bf16.msra.mxu1 %v2459_v26 }
 0xb03   : > { %2312 = vmatpush3.bf16.msra.mxu0 %v2455_v6  ;;  %1732 = vmatprep.subr.bf16.mxu1 %v2464_v27  ;;  %v2494_v6 = vld [vmem:[#allocation10 + $0x78] sm:$0xff]  }
 0xb04   : > { %2215 = vmatprep.subr.bf16.mxu0 %v2480_v44 }
 0xb06   : > { %1733 = vmatpush1.bf16.msra.mxu1 %v2462_v28  ;;  %v2160_v28 = vld [vmem:[%s3295_s24] ss:$0 sm:$0xff] }
 0xb07   : > { %1734 = vmatprep.subr.bf16.mxu1 %v2467_v32 }
 0xb0a   : > { %1735 = vmatpush1.bf16.msra.mxu1 %v2465_v33 }
 0xb0b   : > { %1736 = vmatprep.subr.bf16.mxu1 %v2470_v34 }
 0xb0e   : > { %1737 = vmatpush1.bf16.msra.mxu1 %v2468_v35 }
 0xb0f   : > { %1738 = vmatprep.subr.bf16.mxu1 %v2473_v36 }
 0xb12   : > { %1739 = vmatpush1.bf16.msra.mxu1 %v2471_v37 }
 0xb13   : > { %1740 = vmatprep.subr.bf16.mxu1 %v2476_v38 }
 0xb16   : > { %1741 = vmatpush1.bf16.msra.mxu1 %v2474_v39 }
 0xb17   : > { %1742 = vmatprep.subr.bf16.mxu1 %v2479_v40 }
 0xb1a   : > { %1743 = vmatpush1.bf16.msra.mxu1 %v2477_v41 }
 0xbd0   : > { %v1462_v7 = vpop.f32.mrb[18].mxu1 }
 0xbd1   : > { %1475 = vrot.lane.b32.xlu1 %v1462_v7, %s2752_s8  ;;  %v2296_v8 = vpop.f32.mrb[19].mxu1  ;;  %v2495_v7 = vld [vmem:[#allocation10 + $0x38] sm:$0xff]   ;;  %s1958_s8 = scalar_lea.sflag [#allocation4], %s3038_s3 }
 0xbd2   : > { %v522_v8 = vld [vmem:[%s3294_s10] sm:$0x3]  ;;  %s2662_s10 = scalar_lea.vmem %s3211_s17, 128 }
 0xbd3   : > { %v1641_v9 = vrot.slane %v522_v8, %v586_v45  ;;  %v1645_v10 = vrot.slane %v522_v8, %v590_v43  ;;  %p2663_p6 = scmp.ne.s32.totalorder %s3211_s17, %s2662_s10  ;;  %p2670_p1 = scmp.lt.s32.totalorder %s2668_s19, %s2662_s10 }
 0xbd5   : > { %p2664_p2 = pnand %p2663_p6, %p3297_p0  ;;  %p2671_p11 = por %p2670_p1, %p2669_p10 }
 0xbd7   : > { %p2665_p5 = pneg %p2664_p2 }
 0xbd9   : > { %p2672_p12 = pnand %p2671_p11, %p2665_p5 }
 0xc43   : > { %v1476_v14 = vpop.permute.xlu1 %1475 }
 0xc44   : > { %v1482_v15 = vsel %vm1481_vm4, %v1480_v13, %v1476_v14 }
 0xc45   : > { %v1483_v16 = vpack.c.bf16 %v1482_v15, %v1482_v15 }
 0xc47   : > { %2314 = vmatmul.mubr.bf16.vlgmr.msra.gmra.mrb[4].mxu0 %v1483_v16 }
 0xc48   : > { %2216 = vmatpush3.bf16.msra.mxu0 %v2481_v46 }
 0xc49   : > { %2217 = vmatprep.subr.bf16.mxu0 %v2482_v47 }
 0xc4c   : > { %2218 = vmatpush3.bf16.msra.mxu0 %v2483_v48 }
 0xc4d   : > { %2219 = vmatprep.subr.bf16.mxu0 %v2484_v59 }
 0xc50   : > { %2220 = vmatpush3.bf16.msra.mxu0 %v2485_v61 }
 0xc51   : > { %2221 = vmatprep.subr.bf16.mxu0 %v2486_v62 }
 0xc54   : > { %2222 = vmatpush3.bf16.msra.mxu0 %v2487_v60 }
 0xc55   : > { %2223 = vmatprep.subr.bf16.mxu0 %v2488_v63 }
 0xc58   : > { %2224 = vmatpush3.bf16.msra.mxu0 %v2489_v1 }
 0xc59   : > { %2225 = vmatprep.subr.bf16.mxu0 %v2490_v2 }
 0xc5c   : > { %2226 = vmatpush3.bf16.msra.mxu0 %v2491_v4 }
 0xc5d   : > { %2227 = vmatprep.subr.bf16.mxu0 %v2492_v5 }
 0xc60   : > { %2228 = vmatpush3.bf16.msra.mxu0 %v2493_v25 }
 0xc61   : > { %2229 = vmatprep.subr.bf16.mxu0 %v2494_v6 }
 0xc64   : > { %2230 = vmatpush3.bf16.msra.mxu0 %v2495_v7 }
 0xd1a   : > { %v1588_v17 = vpop.f32.mrb[4].mxu0 }
 0xd1b   : > { %v1589_v18 = vadd.f32 %v2133_v3, %v1588_v17  ;;  %v2315_v19 = vpop.f32.mrb[5].mxu0 }
 0xd1c   : > { %v1591_v20 = vpop.f32.mrb[6].mxu0 }
 0xd1d   : > { %v3182_v21 = vadd.f32 %v1589_v18, %v3056_v0  ;;  %v2316_v12 = vpop.f32.mrb[7].mxu0 }
 0xd1f   : > { %1595 = vadd.xlane.f32.xlu0 %v3182_v21 }
 0xdac   : > { %v1596_v29 = vpop.xlane.xlu0 %1595 }
 0xdad   : > { %v1597_v30 = vmul.f32 0.0078125, %v1596_v29 }
 0xdaf   : > { %v1598_v0 = vsub.f32 %v3182_v21, %v1597_v30 }
 0xdb1   : > { %v1599_v31 = vmul.f32 %v1598_v0, %v1598_v0 }
 0xdb3   : > { %1600 = vadd.xlane.f32.xlu1 %v1599_v31 }
 0xe40   : > { %v1601_v49 = vpop.xlane.xlu1 %1600 }
 0xe41   : > { %v1602_v50 = vmul.f32 0.0078125, %v1601_v49 }
 0xe43   : > { %v1603_v51 = vadd.f32 1e-06, %v1602_v50 }
 0xe45   : > { %2514 = vrsqrt.f32 %v1603_v51 }
 0xe4f   : > { %v2515_v52 = vpop.eup %2514 }
 0xe50   : > { %v1605_v54 = vmul.f32 %v2515_v52, %v1598_v0 }
 0xe52   : > { %v1612_v56 = vmul.f32 %v2142_v53, %v1605_v54 }
 0xe54   : > { %v1619_v57 = vadd.f32 %v2143_v55, %v1612_v56 }
 0xe56   : > { %v1620_v58 = vpack.c.bf16 %v1619_v57, %v1619_v57 }
 0xe58   : > { %1761 = vmatmul.mubr.bf16.vlgmr.msra.gmra.mrb[20].mxu1 %v1620_v58 }
 0xf2b   : > { %v1762_v11 = vpop.f32.mrb[20].mxu1 }
 0xf2c   : > { %v1763_v13 = vadd.f32 %v1762_v11, %v1641_v9  ;;  %v1764_v14 = vpop.f32.mrb[21].mxu1 }
 0xf2d   : > { %v1765_v15 = vadd.f32 %v1764_v14, %v1645_v10  ;;  %v1766_v16 = vpop.f32.mrb[22].mxu1 }
 0xf2e   : > { %v1771_v3 = vmul.f32 0.70710677, %v1763_v13  ;;  %v1767_v17 = vpop.f32.mrb[23].mxu1  ;;  %v1769_v12 = vmul.f32 0.5, %v1763_v13 }
 0xf2f   : > { %v1772_v18 = vmul.f32 0.70710677, %v1765_v15  ;;  %v1770_v45 = vmul.f32 0.5, %v1765_v15 }
 0xf30   : > { %2516 = verf.f32 %v1771_v3 }
 0xf31   : > { %2518 = verf.f32 %v1772_v18 }
 0xf3a   : > { %v2517_v19 = vpop.eup %2516 }
 0xf3b   : > { %v2519_v20 = vpop.eup %2518  ;;  %v1775_v22 = vadd.f32 1.0, %v2517_v19 }
 0xf3c   : > { %v1776_v23 = vadd.f32 1.0, %v2519_v20 }
 0xf3d   : > { %v1777_v42 = vmul.f32 %v1775_v22, %v1769_v12 }
 0xf3e   : > { %v1778_v43 = vmul.f32 %v1776_v23, %v1770_v45 }
 0xf3f   : > { %v1779_v26 = vpack.c.bf16 %v1777_v42, %v1777_v42 }
 0xf40   : > { %v1780_v24 = vpack.c.bf16 %v1778_v43, %v1778_v43 }
 0xf42   : > { %1947 = vmatprep.mubr.bf16.mxu0 %v1780_v24 }
 0xf43   : > { %1948 = vmatmul.mubr.bf16.vlgmr.msra.gmra.mrb[8].mxu0 %v1779_v26 }
0x1016   : > { %v2231_v27 = vpop.f32.mrb[8].mxu0 }
0x1017   : > { %v2232_v29 = vpop.f32.mrb[9].mxu0 }
0x1018   : > { %v2233_v30 = vadd.f32 %v2232_v29, %v2231_v27  ;;  %v2234_v0 = vpop.f32.mrb[10].mxu0 }
0x1019   : > { %v2235_v31 = vpop.f32.mrb[11].mxu0 }
0x101a   : > { %v1950_v32 = vadd.f32 %v2233_v30, %v2160_v28 }
0x101c   : > { %v1955_v33 = vadd.f32 %v1950_v32, %v3182_v21 }
0x101e   : > { %1956 = vst [vmem:[%s513_s15] sm:$0xff] %v1955_v33 }
0x101f   : > { %2675 = shalt.err (!%p2672_p12)
}
0x1020   : > { %s2676_s3 = scalar_lea.hbm %s3209_s13, 128  ;;  %s2680_s20 = scalar_lea.hbm %s3296_s12, 256 }
0x1021   : > { %p2677_p13 = scmp.ne.s32.totalorder %s3209_s13, %s2676_s3  ;;  %p2681_p9 = scmp.lt.u32.totalorder %s3209_s13, %s3296_s12 }
0x1022   : > { %p2682_p4 = scmp.lt.u32.totalorder %s2680_s20, %s2676_s3  ;;  %p2684_p6 = scmp.lt.u32.totalorder %s2676_s3, %s3209_s13 }
0x1023   : > { %p2678_p3 = pnand %p2677_p13, %p3297_p0 }
0x1024   : > { %p2683_p8 = por %p2682_p4, %p2681_p9 }
0x1025   : > { %p2679_p7 = pneg %p2678_p3 }
0x1026   : > { %p2685_p2 = por %p2684_p6, %p2683_p8 }
0x1028   : > { %p2686_p5 = pnand %p2685_p2, %p2679_p7 }
0x102a   : > { %2689 = shalt.err (!%p2686_p5)
}
0x102b   : > { %2335 = dma.vmem_to_hbm [thread:$0]  (%p3297_p0), %s3211_s17, 128, %s3209_s13, %s1958_s8  }
0x102c PF: > { %s1983_s16 = sand.u32 1, %s2724_s25   ;;  %p3298_p10 = scmp.ne.s32.totalorder %s3285_s29, 0 }
0x102d   : > { %p3299_p1 = scmp.ge.s32.totalorder %s2736_s28, 2  ;;  %s1984_s10 = scalar_lea.sflag [#allocation4], %s1983_s16 }
0x102f   : > { %p2355_p11 = pnand %p3299_p1, %p3298_p10 }
0x1031   : > { %2719 = dma.done.wait (!%p2355_p11), %s1984_s10, 128  }
0x1032   : > { %2721 = vsyncadd (!%p2355_p11), %s1984_s10, 4294967168  ;;  %p28_p12 = scmp.ge.s32.totalorder %s2962_s18, 4   ;;  %s3300_s25 = smov %s2728_s26 }
0x1033   : > { %s3301_s26 = smov %s2732_s27  ;;  %s3302_s27 = smov %s2973_s23 }
0x1034   : > { %s3303_s28 = smov %s2962_s18  ;;  %30 = sbr.rel (!%p28_p12) target bundleno = 14 (0xe), region = 133 }
0x103b   :  { %1989 = vsyncpa [#allocation3], 1 }
0x103c   :  { %1991 = vsyncpa [#allocation3 + $0x1], 1 }
0x103d   :  { %1992 = vsyncpa [#allocation6], 1 }
0x103e   :  { %1993 = vsyncpa [#allocation9], 1 }
0x103f   :  { %1994 = vsyncpa [#allocation4], 1 }
0x1040   :  { %1996 = vsyncpa [#allocation4 + $0x1], 1 }

</bundles_post_ra>
